<compile_context>
chip_gen: v5e
topology: v5e:2x2
jax: 0.10.0
libtpu: 0.0.40
codegen_flags: <defaults>
</compile_context>

<pallas_src>
import jax
import jax.numpy as jnp
from jax.experimental import pallas as pl
from jax.experimental.pallas import tpu as pltpu


def multimodal_fusion_kernel(
    vis_ref, txt_ref,
    w1_ref,   # (2, D, D)  stacked [visual, textual] attention W1
    b1_ref,   # (2, D)     stacked attention b1
    w2_ref,   # (D, 2)     attention score vectors as columns
    b2_ref,   # (1, 2)     attention score biases
    wf_ref,   # (2, D, O)  stacked fusion weights
    bf_ref,   # (2, O)     stacked fusion biases
    wc1_ref, bc1_ref, wc2_ref, bc2_ref,   # classifier
    out_ref,  # (Bt, V)
):
    Bt, N, D = vis_ref.shape
    _, S, _ = txt_ref.shape

    # Load the tiny packed bias/score tensors once; slice values statically.
    b1_all = b1_ref[...]     # (2, D)
    w2_all = w2_ref[...]     # (D, 2)
    b2_all = b2_ref[...]     # (1, 2)
    bf_all = bf_ref[...]     # (2, O)

    def attn_pool(x3, idx):
        """x3: (Bt, L, D) -> pooled (Bt, D); idx selects visual(0)/textual(1)."""
        L = x3.shape[1]
        x2 = x3.reshape(Bt * L, D)                              # collapse leading dims
        w1 = w1_ref[idx]                                        # (D, D)
        h = jnp.tanh(
            jnp.dot(x2, w1, preferred_element_type=jnp.float32)
            + b1_all[idx:idx + 1, :])                           # (Bt*L, D)
        # Score reduction on the MXU: (Bt*L, D) @ (D, 2), pick the column we need.
        s_both = jnp.dot(h, w2_all, preferred_element_type=jnp.float32) + b2_all
        s = s_both.reshape(Bt, L, 2)[:, :, idx:idx + 1]         # (Bt, L, 1)
        # Stable softmax over the region/sequence axis, per batch row.
        m = jnp.max(s, axis=1, keepdims=True)                   # (Bt, 1, 1)
        e = jnp.exp(s - m)                                      # (Bt, L, 1)
        denom = jnp.sum(e, axis=1, keepdims=True)               # (Bt, 1, 1)
        a = e * pl.reciprocal(denom, approx=False)              # (Bt, L, 1)
        return jnp.sum(a * x3, axis=1)                          # (Bt, D)

    pooled_v = attn_pool(vis_ref[...], 0)                       # (Bt, D)
    pooled_t = attn_pool(txt_ref[...], 1)                       # (Bt, D)

    fv = jnp.maximum(
        jnp.dot(pooled_v, wf_ref[0], preferred_element_type=jnp.float32)
        + bf_all[0:1, :], 0.0)                                  # (Bt, O)
    ft = jnp.maximum(
        jnp.dot(pooled_t, wf_ref[1], preferred_element_type=jnp.float32)
        + bf_all[1:2, :], 0.0)                                  # (Bt, O)
    fused = fv * ft                                             # (Bt, O)

    h = jnp.maximum(
        jnp.dot(fused, wc1_ref[...], preferred_element_type=jnp.float32)
        + bc1_ref[...], 0.0)                                    # (Bt, 2O)
    logits = jnp.dot(h, wc2_ref[...], preferred_element_type=jnp.float32) + bc2_ref[...]
    out_ref[...] = jax.nn.sigmoid(logits)                       # (Bt, V) lane-dense store


def multimodal_fusion(visual, textual, params, *, block_b=8):
    B, N, D = visual.shape
    _, S, _ = textual.shape
    O = params["wfv"].shape[1]
    V = params["wc2"].shape[1]

    # Batch tile: multiple of 8 (f32 sublane), capped at 128. Pad B up to it.
    Bt = min(max(8, block_b), 128)
    Bp = Bt * pl.cdiv(B, Bt)
    if Bp != B:
        pad = Bp - B
        visual = jnp.pad(visual, ((0, pad), (0, 0), (0, 0)))
        textual = jnp.pad(textual, ((0, pad), (0, 0), (0, 0)))
    grid = (Bp // Bt,)

    # Consolidate the 16 parameter tensors into 10 stacked operands.
    w1_all = jnp.stack([params["wv1"], params["wt1"]], axis=0)            # (2, D, D)
    b1_all = jnp.concatenate([params["bv1"], params["bt1"]], axis=0)      # (2, D)
    w2_all = jnp.concatenate([params["wv2"], params["wt2"]], axis=0).T    # (D, 2)
    b2_all = jnp.concatenate([params["bv2"], params["bt2"]], axis=1)      # (1, 2)
    wf_all = jnp.stack([params["wfv"], params["wft"]], axis=0)            # (2, D, O)
    bf_all = jnp.concatenate([params["bfv"], params["bft"]], axis=0)      # (2, O)
    weights = [w1_all, b1_all, w2_all, b2_all, wf_all, bf_all,
               params["wc1"], params["bc1"], params["wc2"], params["bc2"]]

    def const_spec(arr):
        nd = arr.ndim
        return pl.BlockSpec(arr.shape, lambda i, _nd=nd: (0,) * _nd)

    # Advisory cost estimate for XLA's scheduler.
    flops = int(
        2 * Bp * (N + S) * D * D          # attention W1 matmuls
        + 2 * Bp * (N + S) * D * 2        # attention score matmuls
        + 2 * Bp * (N + S) * D            # weighted pooling
        + 2 * 2 * Bp * D * O              # modality fusion projections
        + 2 * Bp * O * (2 * O)            # classifier hidden
        + 2 * Bp * (2 * O) * V)           # classifier output
    transcendentals = int(Bp * (N + S) * (D + 1) + Bp * V)   # tanh + exp + sigmoid
    bytes_accessed = int(4 * (visual.size + textual.size + Bp * V
                              + sum(int(w.size) for w in weights)))

    out = pl.pallas_call(
        multimodal_fusion_kernel,
        out_shape=jax.ShapeDtypeStruct((Bp, V), jnp.float32),
        grid=grid,
        in_specs=[
            pl.BlockSpec((Bt, N, D), lambda i: (i, 0, 0)),
            pl.BlockSpec((Bt, S, D), lambda i: (i, 0, 0)),
            *[const_spec(w) for w in weights],
        ],
        out_specs=pl.BlockSpec((Bt, V), lambda i: (i, 0)),
        compiler_params=pltpu.CompilerParams(dimension_semantics=("parallel",)),
        cost_estimate=pl.CostEstimate(
            flops=flops, transcendentals=transcendentals, bytes_accessed=bytes_accessed),
    )(visual, textual, *weights)

    return out[:B]


def multimodal_fusion_ref(visual, textual, p):
    """Pure-JAX reference for verification."""
    def pool(x, w1, b1, w2_row, b2):
        h = jnp.tanh(x @ w1 + b1)                          # (B, L, D)
        s = jnp.sum(h * w2_row, axis=-1, keepdims=True) + b2
        a = jax.nn.softmax(s, axis=1)
        return jnp.sum(a * x, axis=1)                      # (B, D)

    pv = pool(visual, p["wv1"], p["bv1"], p["wv2"], p["bv2"])
    pt = pool(textual, p["wt1"], p["bt1"], p["wt2"], p["bt2"])
    fv = jax.nn.relu(pv @ p["wfv"] + p["bfv"])
    ft = jax.nn.relu(pt @ p["wft"] + p["bft"])
    fused = fv * ft
    h = jax.nn.relu(fused @ p["wc1"] + p["bc1"])
    logits = h @ p["wc2"] + p["bc2"]
    return jax.nn.sigmoid(logits)


def make_params(key, D, O, V):
    keys = jax.random.split(key, 16)
    def w(k, shape, fan_in):
        return (jax.random.normal(k, shape, jnp.float32) / jnp.sqrt(fan_in)).astype(jnp.float32)
    return {
        # visual AttentionPooling
        "wv1": w(keys[0], (D, D), D), "bv1": jnp.zeros((1, D), jnp.float32),
        "wv2": w(keys[1], (1, D), D), "bv2": jnp.zeros((1, 1), jnp.float32),
        # textual AttentionPooling
        "wt1": w(keys[2], (D, D), D), "bt1": jnp.zeros((1, D), jnp.float32),
        "wt2": w(keys[3], (1, D), D), "bt2": jnp.zeros((1, 1), jnp.float32),
        # ModalityFusion
        "wfv": w(keys[4], (D, O), D), "bfv": w(keys[5], (1, O), D),
        "wft": w(keys[6], (D, O), D), "bft": w(keys[7], (1, O), D),
        # AnswerClassifier
        "wc1": w(keys[8], (O, 2 * O), O), "bc1": w(keys[9], (1, 2 * O), O),
        "wc2": w(keys[10], (2 * O, V), 2 * O), "bc2": w(keys[11], (1, V), 2 * O),
    }


if __name__ == "__main__":
    # Small, module-consistent shapes; B=16 with Bt=8 -> 2 parallel grid steps.
    B, N, S, D, O, V = 16, 8, 8, 32, 32, 256

    key = jax.random.PRNGKey(0)
    kv, kt, kp = jax.random.split(key, 3)
    visual = jax.random.normal(kv, (B, N, D), jnp.float32)
    textual = jax.random.normal(kt, (B, S, D), jnp.float32)
    params = make_params(kp, D, O, V)

    scores = multimodal_fusion(visual, textual, params, block_b=8)
    scores = jax.block_until_ready(scores)

    ref = multimodal_fusion_ref(visual, textual, params)
    assert scores.shape == (B, V)
    assert jnp.allclose(scores, ref, rtol=1e-5, atol=1e-5), "mismatch vs pure-JAX reference"

    # TODO(synk): BCE loss path (targets != None) and dropout are not implemented
    # (inference-only forward; the reference forward returns scores only).
    # TODO(synk): for production D/V (e.g. D~2048, V~3129), cast activations/weights
    # to bf16 (keep f32 accumulation) and raise vmem_limit_bytes / use single-buffered
    # weight blocks on v7x's 64 MiB VMEM.
    print("KERNEL_OK")
</pallas_src>

<mosaic_0001>
module attributes {stable_mosaic.version = 11 : i64} {
  func.func @multimodal_fusion_kernel(%arg0: i32, %arg1: memref<8x8x32xf32, #tpu.memory_space<vmem>>, %arg2: memref<8x8x32xf32, #tpu.memory_space<vmem>>, %arg3: memref<2x32x32xf32, #tpu.memory_space<vmem>>, %arg4: memref<2x32xf32, #tpu.memory_space<vmem>>, %arg5: memref<32x2xf32, #tpu.memory_space<vmem>>, %arg6: memref<1x2xf32, #tpu.memory_space<vmem>>, %arg7: memref<2x32x32xf32, #tpu.memory_space<vmem>>, %arg8: memref<2x32xf32, #tpu.memory_space<vmem>>, %arg9: memref<32x64xf32, #tpu.memory_space<vmem>>, %arg10: memref<1x64xf32, #tpu.memory_space<vmem>>, %arg11: memref<64x256xf32, #tpu.memory_space<vmem>>, %arg12: memref<1x256xf32, #tpu.memory_space<vmem>>, %arg13: memref<8x256xf32, #tpu.memory_space<vmem>>) attributes {dimension_semantics = [#tpu.dimension_semantics<parallel>], iteration_bounds = array<i64: 2>, scalar_prefetch = 0 : i64, scratch_operands = 0 : i64, tpu.core_type = #tpu.core_type<tc>, window_params = [{transform_indices = @transform_0, window_bounds = array<i64: 8, 8, 32>}, {transform_indices = @transform_1, window_bounds = array<i64: 8, 8, 32>}, {pipeline_mode = #tpu.pipeline_mode<synchronous>, transform_indices = @transform_2, window_bounds = array<i64: 2, 32, 32>}, {pipeline_mode = #tpu.pipeline_mode<synchronous>, transform_indices = @transform_3, window_bounds = array<i64: 2, 32>}, {pipeline_mode = #tpu.pipeline_mode<synchronous>, transform_indices = @transform_4, window_bounds = array<i64: 32, 2>}, {pipeline_mode = #tpu.pipeline_mode<synchronous>, transform_indices = @transform_5, window_bounds = array<i64: 1, 2>}, {pipeline_mode = #tpu.pipeline_mode<synchronous>, transform_indices = @transform_6, window_bounds = array<i64: 2, 32, 32>}, {pipeline_mode = #tpu.pipeline_mode<synchronous>, transform_indices = @transform_7, window_bounds = array<i64: 2, 32>}, {pipeline_mode = #tpu.pipeline_mode<synchronous>, transform_indices = @transform_8, window_bounds = array<i64: 32, 64>}, {pipeline_mode = #tpu.pipeline_mode<synchronous>, transform_indices = @transform_9, window_bounds = array<i64: 1, 64>}, {pipeline_mode = #tpu.pipeline_mode<synchronous>, transform_indices = @transform_10, window_bounds = array<i64: 64, 256>}, {pipeline_mode = #tpu.pipeline_mode<synchronous>, transform_indices = @transform_11, window_bounds = array<i64: 1, 256>}, {transform_indices = @transform_12, window_bounds = array<i64: 8, 256>}]} {
    %c0 = arith.constant 0 : index
    %c0_0 = arith.constant 0 : index
    %0 = vector.load %arg4[%c0, %c0_0] : memref<2x32xf32, #tpu.memory_space<vmem>>, vector<2x32xf32>
    %c0_1 = arith.constant 0 : index
    %c0_2 = arith.constant 0 : index
    %1 = vector.load %arg5[%c0_1, %c0_2] : memref<32x2xf32, #tpu.memory_space<vmem>>, vector<32x2xf32>
    %c0_3 = arith.constant 0 : index
    %c0_4 = arith.constant 0 : index
    %2 = vector.load %arg6[%c0_3, %c0_4] : memref<1x2xf32, #tpu.memory_space<vmem>>, vector<1x2xf32>
    %c0_5 = arith.constant 0 : index
    %c0_6 = arith.constant 0 : index
    %3 = vector.load %arg8[%c0_5, %c0_6] : memref<2x32xf32, #tpu.memory_space<vmem>>, vector<2x32xf32>
    %c0_7 = arith.constant 0 : index
    %c0_8 = arith.constant 0 : index
    %c0_9 = arith.constant 0 : index
    %4 = vector.load %arg1[%c0_7, %c0_8, %c0_9] : memref<8x8x32xf32, #tpu.memory_space<vmem>>, vector<8x8x32xf32>
    %5 = vector.shape_cast %4 : vector<8x8x32xf32> to vector<64x32xf32>
    %c0_10 = arith.constant 0 : index
    %c0_11 = arith.constant 0 : index
    %c0_12 = arith.constant 0 : index
    %6 = vector.load %arg3[%c0_10, %c0_11, %c0_12] : memref<2x32x32xf32, #tpu.memory_space<vmem>>, vector<1x32x32xf32>
    %7 = vector.shape_cast %6 : vector<1x32x32xf32> to vector<32x32xf32>
    %cst = arith.constant dense<0.000000e+00> : vector<64x32xf32>
    %8 = tpu.matmul %5, %7, %cst {dimension_numbers = #tpu.dot_dimension_numbers<[1], [0], [0], [1], [0, 0, 1, 1], [], []>} : vector<64x32xf32>, vector<32x32xf32>, vector<64x32xf32> -> vector<64x32xf32>
    %9 = vector.extract_strided_slice %0 {offsets = [0, 0], sizes = [1, 32], strides = [1, 1]} : vector<2x32xf32> to vector<1x32xf32>
    %10 = vector.broadcast %9 : vector<1x32xf32> to vector<64x32xf32>
    %11 = arith.addf %8, %10 : vector<64x32xf32>
    %12 = math.tanh %11 : vector<64x32xf32>
    %cst_13 = arith.constant dense<0.000000e+00> : vector<64x2xf32>
    %13 = tpu.matmul %12, %1, %cst_13 {dimension_numbers = #tpu.dot_dimension_numbers<[1], [0], [0], [1], [0, 0, 1, 1], [], []>} : vector<64x32xf32>, vector<32x2xf32>, vector<64x2xf32> -> vector<64x2xf32>
    %14 = vector.broadcast %2 : vector<1x2xf32> to vector<64x2xf32>
    %15 = arith.addf %13, %14 : vector<64x2xf32>
    %16 = vector.shape_cast %15 : vector<64x2xf32> to vector<8x8x2xf32>
    %17 = vector.extract_strided_slice %16 {offsets = [0, 0, 0], sizes = [8, 8, 1], strides = [1, 1, 1]} : vector<8x8x2xf32> to vector<8x8x1xf32>
    %cst_14 = arith.constant dense<0xFF800000> : vector<8x1xf32>
    %18 = vector.multi_reduction <maximumf>, %17, %cst_14 [1] : vector<8x8x1xf32> to vector<8x1xf32>
    %19 = vector.shape_cast %18 : vector<8x1xf32> to vector<8x1x1xf32>
    %20 = vector.broadcast %19 : vector<8x1x1xf32> to vector<8x8x1xf32>
    %21 = arith.subf %17, %20 : vector<8x8x1xf32>
    %22 = math.exp %21 : vector<8x8x1xf32>
    %cst_15 = arith.constant dense<0.000000e+00> : vector<8x1xf32>
    %23 = vector.multi_reduction <add>, %22, %cst_15 [1] : vector<8x8x1xf32> to vector<8x1xf32>
    %24 = vector.shape_cast %23 : vector<8x1xf32> to vector<8x1x1xf32>
    %25 = tpu.reciprocal %24 : vector<8x1x1xf32> -> vector<8x1x1xf32>
    %26 = vector.broadcast %25 : vector<8x1x1xf32> to vector<8x8x1xf32>
    %27 = arith.mulf %22, %26 : vector<8x8x1xf32>
    %28 = vector.broadcast %27 : vector<8x8x1xf32> to vector<8x8x32xf32>
    %29 = arith.mulf %28, %4 : vector<8x8x32xf32>
    %cst_16 = arith.constant dense<0.000000e+00> : vector<8x32xf32>
    %30 = vector.multi_reduction <add>, %29, %cst_16 [1] : vector<8x8x32xf32> to vector<8x32xf32>
    %c0_17 = arith.constant 0 : index
    %c0_18 = arith.constant 0 : index
    %c0_19 = arith.constant 0 : index
    %31 = vector.load %arg2[%c0_17, %c0_18, %c0_19] : memref<8x8x32xf32, #tpu.memory_space<vmem>>, vector<8x8x32xf32>
    %32 = vector.shape_cast %31 : vector<8x8x32xf32> to vector<64x32xf32>
    %c1 = arith.constant 1 : index
    %c0_20 = arith.constant 0 : index
    %c0_21 = arith.constant 0 : index
    %33 = vector.load %arg3[%c1, %c0_20, %c0_21] : memref<2x32x32xf32, #tpu.memory_space<vmem>>, vector<1x32x32xf32>
    %34 = vector.shape_cast %33 : vector<1x32x32xf32> to vector<32x32xf32>
    %cst_22 = arith.constant dense<0.000000e+00> : vector<64x32xf32>
    %35 = tpu.matmul %32, %34, %cst_22 {dimension_numbers = #tpu.dot_dimension_numbers<[1], [0], [0], [1], [0, 0, 1, 1], [], []>} : vector<64x32xf32>, vector<32x32xf32>, vector<64x32xf32> -> vector<64x32xf32>
    %36 = vector.extract_strided_slice %0 {offsets = [1, 0], sizes = [1, 32], strides = [1, 1]} : vector<2x32xf32> to vector<1x32xf32>
    %37 = vector.broadcast %36 : vector<1x32xf32> to vector<64x32xf32>
    %38 = arith.addf %35, %37 : vector<64x32xf32>
    %39 = math.tanh %38 : vector<64x32xf32>
    %cst_23 = arith.constant dense<0.000000e+00> : vector<64x2xf32>
    %40 = tpu.matmul %39, %1, %cst_23 {dimension_numbers = #tpu.dot_dimension_numbers<[1], [0], [0], [1], [0, 0, 1, 1], [], []>} : vector<64x32xf32>, vector<32x2xf32>, vector<64x2xf32> -> vector<64x2xf32>
    %41 = vector.broadcast %2 : vector<1x2xf32> to vector<64x2xf32>
    %42 = arith.addf %40, %41 : vector<64x2xf32>
    %43 = vector.shape_cast %42 : vector<64x2xf32> to vector<8x8x2xf32>
    %44 = vector.extract_strided_slice %43 {offsets = [0, 0, 1], sizes = [8, 8, 1], strides = [1, 1, 1]} : vector<8x8x2xf32> to vector<8x8x1xf32>
    %cst_24 = arith.constant dense<0xFF800000> : vector<8x1xf32>
    %45 = vector.multi_reduction <maximumf>, %44, %cst_24 [1] : vector<8x8x1xf32> to vector<8x1xf32>
    %46 = vector.shape_cast %45 : vector<8x1xf32> to vector<8x1x1xf32>
    %47 = vector.broadcast %46 : vector<8x1x1xf32> to vector<8x8x1xf32>
    %48 = arith.subf %44, %47 : vector<8x8x1xf32>
    %49 = math.exp %48 : vector<8x8x1xf32>
    %cst_25 = arith.constant dense<0.000000e+00> : vector<8x1xf32>
    %50 = vector.multi_reduction <add>, %49, %cst_25 [1] : vector<8x8x1xf32> to vector<8x1xf32>
    %51 = vector.shape_cast %50 : vector<8x1xf32> to vector<8x1x1xf32>
    %52 = tpu.reciprocal %51 : vector<8x1x1xf32> -> vector<8x1x1xf32>
    %53 = vector.broadcast %52 : vector<8x1x1xf32> to vector<8x8x1xf32>
    %54 = arith.mulf %49, %53 : vector<8x8x1xf32>
    %55 = vector.broadcast %54 : vector<8x8x1xf32> to vector<8x8x32xf32>
    %56 = arith.mulf %55, %31 : vector<8x8x32xf32>
    %cst_26 = arith.constant dense<0.000000e+00> : vector<8x32xf32>
    %57 = vector.multi_reduction <add>, %56, %cst_26 [1] : vector<8x8x32xf32> to vector<8x32xf32>
    %c0_27 = arith.constant 0 : index
    %c0_28 = arith.constant 0 : index
    %c0_29 = arith.constant 0 : index
    %58 = vector.load %arg7[%c0_27, %c0_28, %c0_29] : memref<2x32x32xf32, #tpu.memory_space<vmem>>, vector<1x32x32xf32>
    %59 = vector.shape_cast %58 : vector<1x32x32xf32> to vector<32x32xf32>
    %cst_30 = arith.constant dense<0.000000e+00> : vector<8x32xf32>
    %60 = tpu.matmul %30, %59, %cst_30 {dimension_numbers = #tpu.dot_dimension_numbers<[1], [0], [0], [1], [0, 0, 1, 1], [], []>} : vector<8x32xf32>, vector<32x32xf32>, vector<8x32xf32> -> vector<8x32xf32>
    %61 = vector.extract_strided_slice %3 {offsets = [0, 0], sizes = [1, 32], strides = [1, 1]} : vector<2x32xf32> to vector<1x32xf32>
    %62 = vector.broadcast %61 : vector<1x32xf32> to vector<8x32xf32>
    %63 = arith.addf %60, %62 : vector<8x32xf32>
    %cst_31 = arith.constant 0.000000e+00 : f32
    %64 = vector.broadcast %cst_31 : f32 to vector<8x32xf32>
    %65 = arith.maximumf %63, %64 : vector<8x32xf32>
    %c1_32 = arith.constant 1 : index
    %c0_33 = arith.constant 0 : index
    %c0_34 = arith.constant 0 : index
    %66 = vector.load %arg7[%c1_32, %c0_33, %c0_34] : memref<2x32x32xf32, #tpu.memory_space<vmem>>, vector<1x32x32xf32>
    %67 = vector.shape_cast %66 : vector<1x32x32xf32> to vector<32x32xf32>
    %cst_35 = arith.constant dense<0.000000e+00> : vector<8x32xf32>
    %68 = tpu.matmul %57, %67, %cst_35 {dimension_numbers = #tpu.dot_dimension_numbers<[1], [0], [0], [1], [0, 0, 1, 1], [], []>} : vector<8x32xf32>, vector<32x32xf32>, vector<8x32xf32> -> vector<8x32xf32>
    %69 = vector.extract_strided_slice %3 {offsets = [1, 0], sizes = [1, 32], strides = [1, 1]} : vector<2x32xf32> to vector<1x32xf32>
    %70 = vector.broadcast %69 : vector<1x32xf32> to vector<8x32xf32>
    %71 = arith.addf %68, %70 : vector<8x32xf32>
    %cst_36 = arith.constant 0.000000e+00 : f32
    %72 = vector.broadcast %cst_36 : f32 to vector<8x32xf32>
    %73 = arith.maximumf %71, %72 : vector<8x32xf32>
    %74 = arith.mulf %65, %73 : vector<8x32xf32>
    %c0_37 = arith.constant 0 : index
    %c0_38 = arith.constant 0 : index
    %75 = vector.load %arg9[%c0_37, %c0_38] : memref<32x64xf32, #tpu.memory_space<vmem>>, vector<32x64xf32>
    %cst_39 = arith.constant dense<0.000000e+00> : vector<8x64xf32>
    %76 = tpu.matmul %74, %75, %cst_39 {dimension_numbers = #tpu.dot_dimension_numbers<[1], [0], [0], [1], [0, 0, 1, 1], [], []>} : vector<8x32xf32>, vector<32x64xf32>, vector<8x64xf32> -> vector<8x64xf32>
    %c0_40 = arith.constant 0 : index
    %c0_41 = arith.constant 0 : index
    %77 = vector.load %arg10[%c0_40, %c0_41] : memref<1x64xf32, #tpu.memory_space<vmem>>, vector<1x64xf32>
    %78 = vector.broadcast %77 : vector<1x64xf32> to vector<8x64xf32>
    %79 = arith.addf %76, %78 : vector<8x64xf32>
    %cst_42 = arith.constant 0.000000e+00 : f32
    %80 = vector.broadcast %cst_42 : f32 to vector<8x64xf32>
    %81 = arith.maximumf %79, %80 : vector<8x64xf32>
    %c0_43 = arith.constant 0 : index
    %c0_44 = arith.constant 0 : index
    %82 = vector.load %arg11[%c0_43, %c0_44] : memref<64x256xf32, #tpu.memory_space<vmem>>, vector<64x256xf32>
    %cst_45 = arith.constant dense<0.000000e+00> : vector<8x256xf32>
    %83 = tpu.matmul %81, %82, %cst_45 {dimension_numbers = #tpu.dot_dimension_numbers<[1], [0], [0], [1], [0, 0, 1, 1], [], []>} : vector<8x64xf32>, vector<64x256xf32>, vector<8x256xf32> -> vector<8x256xf32>
    %c0_46 = arith.constant 0 : index
    %c0_47 = arith.constant 0 : index
    %84 = vector.load %arg12[%c0_46, %c0_47] : memref<1x256xf32, #tpu.memory_space<vmem>>, vector<1x256xf32>
    %85 = vector.broadcast %84 : vector<1x256xf32> to vector<8x256xf32>
    %86 = arith.addf %83, %85 : vector<8x256xf32>
    %87 = arith.negf %86 : vector<8x256xf32>
    %88 = math.exp %87 : vector<8x256xf32>
    %cst_48 = arith.constant 1.000000e+00 : f32
    %89 = vector.broadcast %cst_48 : f32 to vector<8x256xf32>
    %90 = arith.addf %89, %88 : vector<8x256xf32>
    %91 = arith.divf %89, %90 : vector<8x256xf32>
    %c0_49 = arith.constant 0 : index
    %c0_50 = arith.constant 0 : index
    %92 = vector.load %arg13[%c0_49, %c0_50] : memref<8x256xf32, #tpu.memory_space<vmem>>, vector<8x256xf32>
    tpu.vector_store %arg13[%c0_49, %c0_50], %91 {strides = array<i32>} : memref<8x256xf32, #tpu.memory_space<vmem>>, vector<8x256xf32>,
    return
  }
  func.func @transform_0(%arg0: i32) -> (i32, i32, i32) {
    %c0_i32 = arith.constant 0 : i32
    %c0_i32_0 = arith.constant 0 : i32
    %c0_i32_1 = arith.constant 0 : i32
    return %arg0, %c0_i32, %c0_i32_0 : i32, i32, i32
  }
  func.func @transform_1(%arg0: i32) -> (i32, i32, i32) {
    %c0_i32 = arith.constant 0 : i32
    %c0_i32_0 = arith.constant 0 : i32
    %c0_i32_1 = arith.constant 0 : i32
    return %arg0, %c0_i32, %c0_i32_0 : i32, i32, i32
  }
  func.func @transform_2(%arg0: i32) -> (i32, i32, i32) {
    %c0_i32 = arith.constant 0 : i32
    %c0_i32_0 = arith.constant 0 : i32
    %c0_i32_1 = arith.constant 0 : i32
    %c0_i32_2 = arith.constant 0 : i32
    return %c0_i32, %c0_i32_0, %c0_i32_1 : i32, i32, i32
  }
  func.func @transform_3(%arg0: i32) -> (i32, i32) {
    %c0_i32 = arith.constant 0 : i32
    %c0_i32_0 = arith.constant 0 : i32
    %c0_i32_1 = arith.constant 0 : i32
    return %c0_i32, %c0_i32_0 : i32, i32
  }
  func.func @transform_4(%arg0: i32) -> (i32, i32) {
    %c0_i32 = arith.constant 0 : i32
    %c0_i32_0 = arith.constant 0 : i32
    %c0_i32_1 = arith.constant 0 : i32
    return %c0_i32, %c0_i32_0 : i32, i32
  }
  func.func @transform_5(%arg0: i32) -> (i32, i32) {
    %c0_i32 = arith.constant 0 : i32
    %c0_i32_0 = arith.constant 0 : i32
    %c0_i32_1 = arith.constant 0 : i32
    return %c0_i32, %c0_i32_0 : i32, i32
  }
  func.func @transform_6(%arg0: i32) -> (i32, i32, i32) {
    %c0_i32 = arith.constant 0 : i32
    %c0_i32_0 = arith.constant 0 : i32
    %c0_i32_1 = arith.constant 0 : i32
    %c0_i32_2 = arith.constant 0 : i32
    return %c0_i32, %c0_i32_0, %c0_i32_1 : i32, i32, i32
  }
  func.func @transform_7(%arg0: i32) -> (i32, i32) {
    %c0_i32 = arith.constant 0 : i32
    %c0_i32_0 = arith.constant 0 : i32
    %c0_i32_1 = arith.constant 0 : i32
    return %c0_i32, %c0_i32_0 : i32, i32
  }
  func.func @transform_8(%arg0: i32) -> (i32, i32) {
    %c0_i32 = arith.constant 0 : i32
    %c0_i32_0 = arith.constant 0 : i32
    %c0_i32_1 = arith.constant 0 : i32
    return %c0_i32, %c0_i32_0 : i32, i32
  }
  func.func @transform_9(%arg0: i32) -> (i32, i32) {
    %c0_i32 = arith.constant 0 : i32
    %c0_i32_0 = arith.constant 0 : i32
    %c0_i32_1 = arith.constant 0 : i32
    return %c0_i32, %c0_i32_0 : i32, i32
  }
  func.func @transform_10(%arg0: i32) -> (i32, i32) {
    %c0_i32 = arith.constant 0 : i32
    %c0_i32_0 = arith.constant 0 : i32
    %c0_i32_1 = arith.constant 0 : i32
    return %c0_i32, %c0_i32_0 : i32, i32
  }
  func.func @transform_11(%arg0: i32) -> (i32, i32) {
    %c0_i32 = arith.constant 0 : i32
    %c0_i32_0 = arith.constant 0 : i32
    %c0_i32_1 = arith.constant 0 : i32
    return %c0_i32, %c0_i32_0 : i32, i32
  }
  func.func @transform_12(%arg0: i32) -> (i32, i32) {
    %c0_i32 = arith.constant 0 : i32
    %c0_i32_0 = arith.constant 0 : i32
    return %arg0, %c0_i32 : i32, i32
  }
}

</mosaic_0001>

<bundles_post_ra>
// kernel: tpu_custom_call.1
= control target key start
LH: loop header
LB: loop body
LE: loop exit
PB: predicated region body
PF: predicated region fallthrough
CT: control target
= control target key end

     0   :  { %s3328_s0 = inlined_call_operand.hbm [shape: f32[16,8,32], index: 0, kind: input, shape index: {}]   ;;  %s3329_s1 = inlined_call_operand.hbm [shape: f32[16,8,32], index: 1, kind: input, shape index: {}]   ;;  %s3330_s2 = inlined_call_operand.hbm [shape: f32[2,32,32], index: 2, kind: input, shape index: {}]   ;;  %s3331_s3 = inlined_call_operand.vmem [shape: f32[2,32], index: 3, kind: input, shape index: {}]   ;;  %s3332_s4 = inlined_call_operand.vmem [shape: f32[32,2], index: 4, kind: input, shape index: {}]   ;;  %s3333_s5 = inlined_call_operand.vmem [shape: f32[1,2], index: 5, kind: input, shape index: {}]   ;;  %s3334_s6 = inlined_call_operand.hbm [shape: f32[2,32,32], index: 6, kind: input, shape index: {}]   ;;  %s3335_s7 = inlined_call_operand.vmem [shape: f32[2,32], index: 7, kind: input, shape index: {}]   ;;  %s3336_s8 = inlined_call_operand.vmem [shape: f32[32,64], index: 8, kind: input, shape index: {}]   ;;  %s3337_s9 = inlined_call_operand.vmem [shape: f32[1,64], index: 9, kind: input, shape index: {}]   ;;  %s3338_s10 = inlined_call_operand.hbm [shape: f32[64,256], index: 10, kind: input, shape index: {}]   ;;  %s3339_s11 = inlined_call_operand.vmem [shape: f32[1,256], index: 11, kind: input, shape index: {}]   ;;  %s3340_s12 = inlined_call_operand.hbm [shape: f32[16,256], index: 12, kind: output, shape index: {}]  }
   0x1   :  { %3352 = sst [smem:[#allocation23_spill]] %s3328_s0 }
   0x2   :  { %3353 = sst [smem:[#allocation24_spill]] %s3330_s2 }
   0x3   :  { %3354 = sst [smem:[#allocation25_spill]] %s3334_s6 }
   0x4   :  { %3355 = sst [smem:[#allocation26_spill]] %s3338_s10 }
   0x5   :  { %17 = vsyncpa [#allocation3], 0 }
   0x6   :  { %19 = vsyncpa [#allocation3 + $0x1], 0 }
   0x7   :  { %20 = vsyncpa [#allocation6], 0 }
   0x8   :  { %22 = vsyncpa [#allocation6 + $0x1], 0 }
   0x9   :  { %23 = vsyncpa [#allocation9], 0 }
   0xa   :  { %24 = vsyncpa [#allocation4], 0 }
   0xb   :  { %26 = vsyncpa [#allocation4 + $0x1], 0  ;;  %s2529_s21 = smov 0   ;;  %s2531_s22 = smov 0  }
   0xc   :  { %s2533_s23 = smov 0   ;;  %s2535_s24 = smov 0  }
   0xd LB: > { %3356 = sst [smem:[#allocation17_spill]] %s2441_s21  ;;  %s2550_s25 = sadd.s32 4294967295, %s2453_s24   ;;  %s2453_s24 = sphi %s2535_s24, %s3386_s24   ;;  %s2449_s23 = sphi %s2533_s23, %s3388_s23   ;;  %s2445_s22 = sphi %s2531_s22, %s3390_s22   ;;  %s2441_s21 = sphi %s2529_s21, %s3389_s21  }
   0xe   : > { %3357 = sst [smem:[#allocation18_spill]] %s2449_s23  ;;  %s1934_s26 = sadd.s32 4294967294, %s2453_s24  }
   0xf   : > { %p52_p0 = scmp.ne.s32.totalorder %s2445_s22, %s2441_s21  ;;  %p53_p1 = scmp.eq.s32.totalorder %s2550_s25, 0 }
  0x10   : > { %p312_p2 = scmp.eq.s32.totalorder %s2550_s25, 1  ;;  %p318_p3 = scmp.eq.s32.totalorder %s1934_s26, 1 }
  0x11   : > { %p2559_p4 = por %p53_p1, %p52_p0  ;;  %p1935_p5 = scmp.ge.s32.totalorder %s2453_s24, 1 }
  0x12   : > { %p2564_p6 = por %p318_p3, %p52_p0  ;;  %p325_p7 = scmp.lt.s32.totalorder %s2453_s24, 3 }
  0x13   : > { %s3361_s2 = sld [smem:[#allocation24_spill]]  ;;  %s2455_s15 = smov [#allocation7]  }
  0x14   : > { %s3359_s28 = scalar_select %p2564_p6, 1, 0 }
  0x15   : > { %p2572_p8 = pnand %p1935_p5, %p325_p7  ;;  %s338_s16 = sshll.u32 %s2455_s15, 4  ;;  %s339_s16 = int_to_ptr.vmem [resolvable:$true] %s338_s16 }
  0x16   : > { %3360 = sst [smem:[#allocation19_spill]] %s3359_s28  ;;  %s3342_s26 = smov 128  }
  0x17   : > { %p2022_p9 = pneg %p2572_p8  ;;  %s3364_s6 = sld [smem:[#allocation25_spill]] }
  0x18   : > { %s3344_s29 = smov 8   ;;  %s2458_s30 = smov [#allocation8]  }
  0x19   : > { %s336_s13 = sshll.u32 %s3361_s2, 4  ;;  %p2580_p10 = pnand %p2022_p9, %p53_p1  ;;  %s337_s13 = int_to_ptr.hbm [resolvable:$true] %s336_s13 }
  0x1a   : > { %s361_s15 = sshll.u32 %s2458_s30, 4  ;;  %s3365_s10 = sld [smem:[#allocation26_spill]]  ;;  %s362_s15 = int_to_ptr.vmem [resolvable:$true] %s361_s15 }
  0x1b   : > { %2025 = dma.hbm_to_vmem [thread:$0]  (!%p2580_p10), %s337_s13, 1024, %s339_s16, [#allocation6], %s3342_s26, %s3342_s26, %s3344_s29  }
  0x1c   : > { %s2459_s13 = smov [#allocation10]   ;;  %s2460_s19 = smov 256  }
  0x1d   : > { %s359_s20 = sshll.u32 %s3364_s6, 4  ;;  %s384_s16 = sshll.u32 %s2459_s13, 4  ;;  %s360_s20 = int_to_ptr.hbm [resolvable:$true] %s359_s20  ;;  %s385_s16 = int_to_ptr.vmem [resolvable:$true] %s384_s16 }
  0x1e   : > { %2028 = dma.hbm_to_vmem [thread:$0]  (!%p2580_p10), %s360_s20, 1024, %s362_s15, [#allocation9], %s3342_s26, %s3342_s26, %s3344_s29  }
  0x1f   : > { %s2461_s30 = smov 16   ;;  %s2604_s2 = sadd.s32 1, %s2453_s24  }
  0x20   : > { %s382_s18 = sshll.u32 %s3365_s10, 4  ;;  %3366 = sst [smem:[#allocation20_spill]] %s2604_s2  ;;  %s383_s18 = int_to_ptr.hbm [resolvable:$true] %s382_s18 }
  0x21   : > { %2031 = dma.hbm_to_vmem [thread:$0]  (!%p2580_p10), %s383_s18, 2048, %s385_s16, [#allocation9], %s2460_s19, %s2460_s19, %s2461_s30  }
  0x22   : > { %s36_s28 = ssub.s32 %s2453_s24, %s2604_s2  ;;  %s39_s6 = sadd.s32 1, %s2449_s23 }
  0x23   : > { %p37_p12 = scmp.eq.s32.totalorder %s36_s28, 0  ;;  %p46_p13 = scmp.ne.s32.totalorder %s2449_s23, %s2445_s22 }
  0x24   : > { %p47_p0 = scmp.eq.s32.totalorder %s2453_s24, 0  ;;  %p2046_p3 = scmp.lt.s32.totalorder %s2453_s24, 2 }
  0x25   : > { %s2614_s20 = scalar_select %p37_p12, %s2449_s23, %s39_s6  }
  0x26   : > { %p48_p5 = por %p47_p0, %p46_p13  ;;  %p2618_p7 = por %p312_p2, %p46_p13 }
  0x27   : > { %3367 = sst [smem:[#allocation21_spill]] %s2614_s20  ;;  %s401_s17 = sand.u32 1, %s2449_s23  }
  0x28   : > { %s3368_s15 = scalar_select %p2618_p7, 1, 0 }
  0x29   : > { %s1997_s18 = sshll.u32 %s2453_s24, 6  ;;  %s1940_s13 = sshll.u32 %s401_s17, 6 }
  0x2a   : > { %3369 = sst [smem:[#allocation22_spill]] %s3368_s15  ;;  %s405_s26 = scalar_lea.vmem [#allocation2], %s1940_s13 }
  0x2b   : > { %s3370_s0 = sld [smem:[#allocation23_spill]]  ;;  %s413_s29 = sshll.u32 %s405_s26, 4  ;;  %s414_s29 = int_to_ptr.vmem [resolvable:$true] %s413_s29 }
  0x2c   : > { %p2629_p9 = pnand %p2046_p3, %p48_p5  ;;  %s432_s23 = scalar_lea.hbm %s3329_s1, %s1997_s18 }
  0x2d   : > { %s427_s2 = scalar_lea.vmem [#allocation5], %s1940_s13  ;;  %s433_s16 = sshll.u32 %s432_s23, 4  ;;  %s434_s16 = int_to_ptr.hbm [resolvable:$true] %s433_s16 }
  0x2e   : > { %s2636_s21 = sshll.u32 %s427_s2, 4  ;;  %s402_s19 = scalar_lea.sflag [#allocation3], %s401_s17  ;;  %s436_s21 = int_to_ptr.vmem [resolvable:$true] %s2636_s21 }
  0x2f   : > { %p2319_p10 = pneg %p2629_p9 }
  0x31   : > { %s410_s30 = scalar_lea.hbm %s3370_s0, %s1997_s18  ;;  %s2322_s20 = scalar_lea.hbm %s3370_s0, 128 }
  0x32   : > { %s411_s28 = sshll.u32 %s410_s30, 4  ;;  %s412_s28 = int_to_ptr.hbm [resolvable:$true] %s411_s28 }
  0x33   : > { %s2315_s30 = sshra.s32 %s412_s28, 4  ;;  %s2316_s30 = int_to_ptr.hbm [resolvable:$true] %s2315_s30 }
  0x34   : > { %s2317_s26 = scalar_lea.hbm %s2316_s30, 64  ;;  %p2323_p0 = scmp.lt.s32.totalorder %s2316_s30, %s3370_s0 }
  0x35   : > { %p2318_p2 = scmp.ne.s32.totalorder %s2316_s30, %s2317_s26  ;;  %p2324_p3 = scmp.lt.s32.totalorder %s2322_s20, %s2317_s26 }
  0x37   : > { %p2320_p12 = pnand %p2319_p10, %p2318_p2  ;;  %p2325_p5 = por %p2324_p3, %p2323_p0 }
  0x39   : > { %p2321_p13 = pneg %p2320_p12 }
  0x3b   : > { %p2326_p11 = pnand %p2325_p5, %p2321_p13 }
  0x3d   : > { %2329 = shalt.err (!%p2326_p11)
}
  0x3e   : > { %s3372_s23 = smov 8   ;;  %s3373_s2 = smov 128  }
  0x3f   : > { %2035 = dma.hbm_to_vmem [thread:$0]  (!%p2629_p9), %s412_s28, 1024, %s414_s29, %s402_s19, %s3373_s2, %s3373_s2, %s3372_s23  }
  0x40   : > { %s423_s15 = sand.u32 1, %s2453_s24   ;;  %s2345_s10 = sshra.s32 %s434_s16, 4  ;;  %s2346_s10 = int_to_ptr.hbm [resolvable:$true] %s2345_s10 }
  0x41   : > { %s424_s17 = scalar_lea.sflag [#allocation6], %s423_s15  ;;  %s2347_s30 = scalar_lea.hbm %s2346_s10, 64 }
  0x42   : > { %p2348_p2 = scmp.ne.s32.totalorder %s2346_s10, %s2347_s30  ;;  %s2352_s18 = scalar_lea.hbm %s3329_s1, 128 }
  0x43   : > { %p2353_p13 = scmp.lt.s32.totalorder %s2346_s10, %s3329_s1  ;;  %p2354_p0 = scmp.lt.s32.totalorder %s2352_s18, %s2347_s30 }
  0x44   : > { %p2350_p11 = pnand %p2348_p2, %p2319_p10 }
  0x45   : > { %p2355_p3 = por %p2354_p0, %p2353_p13 }
  0x46   : > { %p2351_p12 = pneg %p2350_p11 }
  0x48   : > { %p2356_p5 = pnand %p2355_p3, %p2351_p12 }
  0x4a   : > { %2359 = shalt.err (!%p2356_p5)
}
  0x4b   : > { %2038 = dma.hbm_to_vmem [thread:$0]  (!%p2629_p9), %s434_s16, 1024, %s436_s21, %s424_s17, %s3373_s2, %s3373_s2, %s3372_s23  }
  0x4c   : > { %447 = sbr.rel (%p2572_p8) target bundleno = 1075 (0x433), region = 68  ;;  %s2673_s29 = sand.u32 (!%p2572_p8), 1, %s2445_s22  }
  0x4d   : > { %s1947_s0 = sshll.u32 (!%p2572_p8), %s2673_s29, 6  ;;  %s450_s28 = scalar_lea.sflag (!%p2572_p8), [#allocation3], %s2673_s29 }
  0x4e   : > { %s2677_s19 = scalar_lea.vmem (!%p2572_p8), [#allocation2], %s1947_s0 }
  0x51   : > { %2420 = dma.done.wait (%p2559_p4), %s450_s28, 1024  }
  0x52   : > { %2422 = vsyncadd (%p2559_p4), %s450_s28, 4294966272  ;;  %s459_s21 = sand.u32 1, %s2550_s25   ;;  %s2684_s6 = scalar_lea.vmem [#allocation5], %s1947_s0 }
  0x53   : > { %s460_s14 = scalar_lea.sflag [#allocation6], %s459_s21 }
  0x54   : > { %2424 = dma.done.wait (%p2559_p4), %s460_s14, 1024  }
  0x55   : > { %2426 = vsyncadd (%p2559_p4), %s460_s14, 4294966272 }
  0x56   : > { %2428 = dma.done.wait (%p53_p1), [#allocation6], 1024  }
  0x57   : > { %2430 = vsyncadd (%p53_p1), [#allocation6], 4294966272 }
  0x58   : > { %2432 = dma.done.wait (%p53_p1), [#allocation9], 3072  }
  0x59   : > { %2434 = vsyncadd (%p53_p1), [#allocation9], 4294964224  ;;  %v545_v0 = vld [vmem:[#allocation7 + $0x18] sm:$0xff]  ;;  %v544_v2 = vld [vmem:[#allocation7 + $0x10] sm:$0xff]  ;;  %vm547_vm0 = vcmask 261120   ;;  %vm689_vm1 = vcmask 7168  }
  0x5a   : > { %v1062_v1 = vld [vmem:[#allocation7 + $0x38] sm:$0xff]  ;;  %584 = vmatpush.msra.mxu0 %v545_v0  ;;  %v1061_v3 = vld [vmem:[#allocation7 + $0x30] sm:$0xff]  ;;  %v543_v4 = vld [vmem:[#allocation7 + $0x8] sm:$0xff]  ;;  %2000 = vmatpush.msra.mxu1 %v545_v0  ;;  %vm1202_vm2 = vcmask 15368   ;;  %s1952_s26 = sshll.u32 %s2673_s29, 4  ;;  %s1999_s20 = sshll.u32 %s2550_s25, 4 }
  0x5b   : > { %1100 = vmatpush.msra.mxu2 %v1062_v1  ;;  %v1060_v5 = vld [vmem:[#allocation7 + $0x28] sm:$0xff]  ;;  %v542_v6 = vld [vmem:[#allocation7] sm:$0xff]  ;;  %v536_v12 = vld [vmem:[%s2677_s19 + $0x10] sm:$0xff]  ;;  %s1808_s0 = scalar_lea.hbm %s3340_s12, %s1999_s20  ;;  %s524_s28 = scalar_lea.vmem [#allocation11], %s1952_s26 }
  0x5c   : > { %585 = vmatpush.msra.mxu0 %v544_v2  ;;  %v1059_v7 = vld [vmem:[#allocation7 + $0x20] sm:$0xff]  ;;  %2001 = vmatpush.msra.mxu1 %v544_v2  ;;  %v535_v10 = vld [vmem:[%s2677_s19 + $0x8] sm:$0xff]  ;;  %v1052_v13 = vld [vmem:[%s2684_s6 + $0x10] sm:$0xff]  ;;  %s1810_s25 = sshll.u32 %s524_s28, 4  ;;  %s1812_s21 = sshll.u32 %s1808_s0, 4  ;;  %s1811_s25 = int_to_ptr.vmem [resolvable:$true] %s1810_s25  ;;  %s1813_s21 = int_to_ptr.hbm [resolvable:$true] %s1812_s21 }
  0x5d   : > { %1101 = vmatpush.msra.mxu2 %v1061_v3  ;;  %v534_v8 = vld [vmem:[%s2677_s19] sm:$0xff]  ;;  %v1051_v11 = vld [vmem:[%s2684_s6 + $0x8] sm:$0xff]  ;;  %v541_v14 = vld [vmem:[%s2677_s19 + $0x38] sm:$0xff]  ;;  %s1797_s27 = scalar_lea.sflag [#allocation4], %s2673_s29  ;;  %s2389_s16 = sshra.s32 %s1813_s21, 4  ;;  %s2390_s16 = int_to_ptr.hbm [resolvable:$true] %s2389_s16 }
  0x5e   : > { %586 = vmatpush.msra.mxu0 %v543_v4  ;;  %v1050_v9 = vld [vmem:[%s2684_s6] sm:$0xff]  ;;  %2002 = vmatpush.msra.mxu1 %v543_v4  ;;  %v537_v15 = vld [vmem:[%s2677_s19 + $0x18] sm:$0xff]  ;;  %v539_v19 = vld [vmem:[%s2677_s19 + $0x28] sm:$0xff]  ;;  %s2395_s2 = scalar_lea.hbm %s3340_s12, 32  ;;  %p2396_p9 = scmp.lt.s32.totalorder %s2390_s16, %s3340_s12 }
  0x5f   : > { %1102 = vmatpush.msra.mxu2 %v1060_v5  ;;  %v1053_v16 = vld [vmem:[%s2684_s6 + $0x18] sm:$0xff]  ;;  %v538_v17 = vld [vmem:[%s2677_s19 + $0x20] sm:$0xff]  ;;  %v1055_v20 = vld [vmem:[%s2684_s6 + $0x28] sm:$0xff] }
  0x60   : > { %587 = vmatpush.msra.mxu0 %v542_v6  ;;  %2003 = vmatpush.msra.mxu1 %v542_v6  ;;  %v1054_v18 = vld [vmem:[%s2684_s6 + $0x20] sm:$0xff]  ;;  %v540_v21 = vld [vmem:[%s2677_s19 + $0x30] sm:$0xff]  ;;  %v1057_v23 = vld [vmem:[%s2684_s6 + $0x38] sm:$0xff] }
  0x61   : > { %1103 = vmatpush.msra.mxu2 %v1059_v7  ;;  %1953 = vmatmul.msk.f32.vlgmr.msra.gmra.mxu0 %vm547_vm0, %v534_v8  ;;  %v1056_v22 = vld [vmem:[%s2684_s6 + $0x30] sm:$0xff]  ;;  %v531_v24 = vld [vmem:[%s3332_s4 + $0x18] sm:$0xff]  ;;  %v529_v26 = vld [vmem:[%s3332_s4 + $0x8] sm:$0xff] }
  0x62   : > { %1969 = vmatmul.msk.f32.vlgmr.msra.gmra.mxu2 %vm547_vm0, %v1050_v9  ;;  %1960 = vmatmul.msk.f32.vlgmr.msra.gmra.mxu1 %vm547_vm0, %v541_v14  ;;  %v530_v25 = vld [vmem:[%s3332_s4 + $0x10] sm:$0xff]  ;;  %v528_v27 = vld [vmem:[%s3332_s4] sm:$0xff] }
  0x63   : > { %660 = vmatpush.msrb.mxu1 %v531_v24  ;;  %1173 = vmatpush.msra.mxu3 %v531_v24  ;;  %v527_v28 = vld [vmem:[%s3331_s3] sm:$0x3] }
  0x64   : > { %v2745_v29 = vperm.slane %v527_v28, 0  ;;  %v2748_v32 = vperm.slane %v527_v28, 1 }
  0x65   : > { %661 = vmatpush.msrb.mxu1 %v530_v25  ;;  %1174 = vmatpush.msra.mxu3 %v530_v25 }
  0x67   : > { %662 = vmatpush.msrb.mxu1 %v529_v26  ;;  %1175 = vmatpush.msra.mxu3 %v529_v26 }
  0x69   : > { %1954 = vmatmul.msk.f32.gmra.mxu0 %vm547_vm0, %v535_v10  ;;  %663 = vmatpush.msrb.mxu1 %v528_v27 }
  0x6a   : > { %1970 = vmatmul.msk.f32.gmra.mxu2 %vm547_vm0, %v1051_v11  ;;  %1176 = vmatpush.msra.mxu3 %v528_v27 }
  0x71   : > { %1955 = vmatmul.msk.f32.gmra.mxu0 %vm547_vm0, %v536_v12 }
  0x72   : > { %1971 = vmatmul.msk.f32.gmra.mxu2 %vm547_vm0, %v1052_v13 }
  0x79   : > { %1956 = vmatmul.msk.f32.gmra.mxu0 %vm547_vm0, %v537_v15  ;;  %v2784_v15 = vld [vmem:[%s3333_s5] ss:$0 sm:$0xff] }
  0x7a   : > { %1972 = vmatmul.msk.f32.gmra.mxu2 %vm547_vm0, %v1053_v16 }
  0x81   : > { %1957 = vmatmul.msk.f32.gmra.mxu0 %vm547_vm0, %v538_v17 }
  0x82   : > { %1973 = vmatmul.msk.f32.gmra.mxu2 %vm547_vm0, %v1054_v18 }
  0x89   : > { %1958 = vmatmul.msk.f32.gmra.mxu0 %vm547_vm0, %v539_v19 }
  0x8a   : > { %1974 = vmatmul.msk.f32.gmra.mxu2 %vm547_vm0, %v1055_v20 }
  0x91   : > { %1959 = vmatmul.msk.f32.gmra.mxu0 %vm547_vm0, %v540_v21 }
  0x92   : > { %1975 = vmatmul.msk.f32.gmra.mxu2 %vm547_vm0, %v1056_v22 }
  0x9a   : > { %1976 = vmatmul.msk.f32.gmra.mxu2 %vm547_vm0, %v1057_v23 }
  0xde   : > { %v589_v30 = vpop.f32.mrf.mxu0 }
  0xdf   : > { %v590_v31 = vadd.f32 %v589_v30, %v2745_v29  ;;  %v610_v4 = vpop.f32.mrf.mxu1 }
  0xe0   : > { %v611_v5 = vadd.f32 %v610_v4, %v2745_v29 }
  0xe1   : > { %2105 = vtanh.f32 %v590_v31 }
  0xe5   : > { %v1105_v33 = vpop.f32.mrf.mxu2 }
  0xe6   : > { %v1106_v34 = vadd.f32 %v1105_v33, %v2748_v32  ;;  %v592_v35 = vpop.f32.mrf.mxu0 }
  0xe7   : > { %v2106_v36 = vpop.eup %2105  ;;  %v593_v37 = vadd.f32 %v592_v35, %v2745_v29 }
  0xe8   : > { %2107 = vtanh.f32 %v1106_v34  ;;  %1961 = vmatmul.msk.f32.vlgmr.msrb.gmra.mxu1 %vm547_vm0, %v2106_v36 }
  0xe9   : > { %2109 = vtanh.f32 %v593_v37 }
  0xed   : > { %v1108_v38 = vpop.f32.mrf.mxu2 }
  0xee   : > { %v2108_v39 = vpop.eup %2107  ;;  %v1109_v40 = vadd.f32 %v1108_v38, %v2748_v32  ;;  %v595_v41 = vpop.f32.mrf.mxu0 }
  0xef   : > { %1977 = vmatmul.msk.f32.vlgmr.msra.gmra.mxu3 %vm547_vm0, %v2108_v39  ;;  %v2110_v42 = vpop.eup %2109  ;;  %v596_v43 = vadd.f32 %v595_v41, %v2745_v29 }
  0xf0   : > { %2111 = vtanh.f32 %v1109_v40  ;;  %1962 = vmatmul.msk.f32.gmra.mxu1 %vm547_vm0, %v2110_v42 }
  0xf1   : > { %2113 = vtanh.f32 %v596_v43 }
  0xf5   : > { %v1111_v44 = vpop.f32.mrf.mxu2 }
  0xf6   : > { %v2112_v45 = vpop.eup %2111  ;;  %v1112_v46 = vadd.f32 %v1111_v44, %v2748_v32  ;;  %v598_v47 = vpop.f32.mrf.mxu0 }
  0xf7   : > { %1978 = vmatmul.msk.f32.gmra.mxu3 %vm547_vm0, %v2112_v45  ;;  %v2114_v48 = vpop.eup %2113  ;;  %v599_v49 = vadd.f32 %v598_v47, %v2745_v29 }
  0xf8   : > { %2115 = vtanh.f32 %v1112_v46  ;;  %1963 = vmatmul.msk.f32.gmra.mxu1 %vm547_vm0, %v2114_v48 }
  0xf9   : > { %2117 = vtanh.f32 %v599_v49 }
  0xfd   : > { %v1114_v50 = vpop.f32.mrf.mxu2 }
  0xfe   : > { %v2116_v51 = vpop.eup %2115  ;;  %v1115_v52 = vadd.f32 %v1114_v50, %v2748_v32  ;;  %v601_v53 = vpop.f32.mrf.mxu0 }
  0xff   : > { %1979 = vmatmul.msk.f32.gmra.mxu3 %vm547_vm0, %v2116_v51  ;;  %v2118_v54 = vpop.eup %2117  ;;  %v602_v55 = vadd.f32 %v601_v53, %v2745_v29 }
 0x100   : > { %2119 = vtanh.f32 %v1115_v52  ;;  %1964 = vmatmul.msk.f32.gmra.mxu1 %vm547_vm0, %v2118_v54 }
 0x101   : > { %2121 = vtanh.f32 %v602_v55 }
 0x105   : > { %v1117_v56 = vpop.f32.mrf.mxu2 }
 0x106   : > { %v2120_v57 = vpop.eup %2119  ;;  %v1118_v58 = vadd.f32 %v1117_v56, %v2748_v32  ;;  %v604_v59 = vpop.f32.mrf.mxu0 }
 0x107   : > { %1980 = vmatmul.msk.f32.gmra.mxu3 %vm547_vm0, %v2120_v57  ;;  %v2122_v60 = vpop.eup %2121  ;;  %v605_v61 = vadd.f32 %v604_v59, %v2745_v29 }
 0x108   : > { %2123 = vtanh.f32 %v1118_v58  ;;  %1965 = vmatmul.msk.f32.gmra.mxu1 %vm547_vm0, %v2122_v60 }
 0x109   : > { %2125 = vtanh.f32 %v605_v61 }
 0x10d   : > { %v1120_v62 = vpop.f32.mrf.mxu2 }
 0x10e   : > { %v2124_v63 = vpop.eup %2123  ;;  %v1121_v0 = vadd.f32 %v1120_v62, %v2748_v32  ;;  %v607_v1 = vpop.f32.mrf.mxu0 }
 0x10f   : > { %1981 = vmatmul.msk.f32.gmra.mxu3 %vm547_vm0, %v2124_v63  ;;  %v2126_v2 = vpop.eup %2125  ;;  %v608_v3 = vadd.f32 %v607_v1, %v2745_v29 }
 0x110   : > { %2127 = vtanh.f32 %v1121_v0  ;;  %1966 = vmatmul.msk.f32.gmra.mxu1 %vm547_vm0, %v2126_v2 }
 0x111   : > { %2129 = vtanh.f32 %v608_v3 }
 0x112   : > { %2131 = vtanh.f32 %v611_v5 }
 0x115   : > { %v1123_v6 = vpop.f32.mrf.mxu2 }
 0x116   : > { %v2128_v7 = vpop.eup %2127  ;;  %v1124_v8 = vadd.f32 %v1123_v6, %v2748_v32 }
 0x117   : > { %1982 = vmatmul.msk.f32.gmra.mxu3 %vm547_vm0, %v2128_v7  ;;  %v2130_v9 = vpop.eup %2129 }
 0x118   : > { %2133 = vtanh.f32 %v1124_v8  ;;  %1967 = vmatmul.msk.f32.gmra.mxu1 %vm547_vm0, %v2130_v9  ;;  %v2132_v10 = vpop.eup %2131 }
 0x11d   : > { %v1126_v11 = vpop.f32.mrf.mxu2 }
 0x11e   : > { %v2134_v12 = vpop.eup %2133  ;;  %v1127_v13 = vadd.f32 %v1126_v11, %v2748_v32 }
 0x11f   : > { %1983 = vmatmul.msk.f32.gmra.mxu3 %vm547_vm0, %v2134_v12 }
 0x120   : > { %2135 = vtanh.f32 %v1127_v13  ;;  %1968 = vmatmul.msk.f32.gmra.mxu1 %vm547_vm0, %v2132_v10 }
 0x126   : > { %v2136_v14 = vpop.eup %2135 }
 0x127   : > { %1984 = vmatmul.msk.f32.gmra.mxu3 %vm547_vm0, %v2136_v14 }
 0x165   : > { %v665_v16 = vpop.f32.mrf.mxu1 }
 0x166   : > { %v666_v17 = vadd.f32 %v2784_v15, %v665_v16 }
 0x168   : > { %v690_v18 = vsel %vm689_vm1, %v666_v17, -inf }
 0x169   : > { %v691_v19 = vrot.slane %v690_v18, 4 }
 0x16b   : > { %v692_v20 = vmax.f32 %v690_v18, %v691_v19 }
 0x16d   : > { %v693_v21 = vrot.slane %v692_v20, 2  ;;  %v668_v22 = vpop.f32.mrf.mxu1 }
 0x16e   : > { %v669_v23 = vadd.f32 %v2784_v15, %v668_v22 }
 0x16f   : > { %v694_v24 = vmax.f32 %v692_v20, %v693_v21 }
 0x170   : > { %v697_v25 = vsel %vm689_vm1, %v669_v23, -inf }
 0x171   : > { %v695_v26 = vrot.slane %v694_v24, 1  ;;  %v698_v27 = vrot.slane %v697_v25, 4 }
 0x172   : > { %v1178_v28 = vpop.f32.mrf.mxu3 }
 0x173   : > { %v1179_v29 = vadd.f32 %v2784_v15, %v1178_v28  ;;  %v696_v30 = vmax.f32 %v694_v24, %v695_v26  ;;  %v699_v31 = vmax.f32 %v697_v25, %v698_v27  ;;  %v2462_v25 = vmov 0  }
 0x174   : > { %2092 = vset.pattern.permute.xlu0 %v2462_v25  ;;  %2094 = vset.pattern.permute.xlu2 %v2462_v25 }
 0x175   : > { %v1203_v32 = vsel %vm1202_vm2, %v1179_v29, -inf  ;;  %v746_v33 = vsub.f32 %v666_v17, %v696_v30  ;;  %v700_v34 = vrot.slane %v699_v31, 2  ;;  %v671_v36 = vpop.f32.mrf.mxu1 }
 0x176   : > { %v1204_v35 = vrot.slane %v1203_v32, 4  ;;  %v672_v37 = vadd.f32 %v2784_v15, %v671_v36 }
 0x177   : > { %v754_v38 = vmul.f32 1.442695, %v746_v33  ;;  %v701_v39 = vmax.f32 %v699_v31, %v700_v34 }
 0x178   : > { %v1205_v40 = vmax.f32 %v1203_v32, %v1204_v35  ;;  %v704_v41 = vsel %vm689_vm1, %v672_v37, -inf }
 0x179   : > { %2137 = vpow2.f32 %v754_v38  ;;  %v702_v42 = vrot.slane %v701_v39, 1  ;;  %v705_v44 = vrot.slane %v704_v41, 4 }
 0x17a   : > { %v1206_v43 = vrot.slane %v1205_v40, 2  ;;  %v1181_v45 = vpop.f32.mrf.mxu3 }
 0x17b   : > { %v2795_v46 = vadd.f32 %v2784_v15, %v1181_v45  ;;  %v703_v47 = vmax.f32 %v701_v39, %v702_v42  ;;  %v706_v49 = vmax.f32 %v704_v41, %v705_v44 }
 0x17c   : > { %v1207_v48 = vmax.f32 %v1205_v40, %v1206_v43 }
 0x17d   : > { %v1210_v50 = vsel %vm1202_vm2, %v2795_v46, -inf  ;;  %v747_v51 = vsub.f32 %v669_v23, %v703_v47  ;;  %v707_v53 = vrot.slane %v706_v49, 2  ;;  %v674_v55 = vpop.f32.mrf.mxu1 }
 0x17e   : > { %v1208_v52 = vrot.slane %v1207_v48, 1  ;;  %v1211_v54 = vrot.slane %v1210_v50, 4  ;;  %v2800_v56 = vadd.f32 %v2784_v15, %v674_v55 }
 0x17f   : > { %v2802_v57 = vpop.eup %2137  ;;  %v756_v58 = vmul.f32 1.442695, %v747_v51  ;;  %v708_v60 = vmax.f32 %v706_v49, %v707_v53 }
 0x180   : > { %v1209_v59 = vmax.f32 %v1207_v48, %v1208_v52  ;;  %v1212_v61 = vmax.f32 %v1210_v50, %v1211_v54  ;;  %v770_v62 = vsel %vm689_vm1, %v2802_v57, 0.0  ;;  %v711_v63 = vsel %vm689_vm1, %v2800_v56, -inf }
 0x181   : > { %v771_v0 = vrot.slane %v770_v62, 4  ;;  %2139 = vpow2.f32 %v756_v58  ;;  %v709_v2 = vrot.slane %v708_v60, 1  ;;  %v712_v5 = vrot.slane %v711_v63, 4 }
 0x182   : > { %v1259_v1 = vsub.f32 %v1179_v29, %v1209_v59  ;;  %v1184_v3 = vpop.f32.mrf.mxu3  ;;  %v1213_v4 = vrot.slane %v1212_v61, 2 }
 0x183   : > { %v2809_v6 = vadd.f32 %v2784_v15, %v1184_v3  ;;  %v772_v7 = vadd.f32 %v771_v0, %v770_v62  ;;  %v710_v9 = vmax.f32 %v708_v60, %v709_v2  ;;  %v713_v11 = vmax.f32 %v711_v63, %v712_v5 }
 0x184   : > { %v1267_v8 = vmul.f32 1.442695, %v1259_v1  ;;  %v1214_v10 = vmax.f32 %v1212_v61, %v1213_v4 }
 0x185   : > { %v1217_v12 = vsel %vm1202_vm2, %v2809_v6, -inf  ;;  %v773_v13 = vrot.slane %v772_v7, 2  ;;  %v748_v14 = vsub.f32 %v672_v37, %v710_v9  ;;  %v677_v17 = vpop.f32.mrf.mxu1  ;;  %v714_v19 = vrot.slane %v713_v11, 2 }
 0x186   : > { %2141 = vpow2.f32 %v1267_v8  ;;  %v1218_v16 = vrot.slane %v1217_v12, 4  ;;  %v1215_v18 = vrot.slane %v1214_v10, 1  ;;  %v2814_v20 = vadd.f32 %v2784_v15, %v677_v17 }
 0x187   : > { %v2816_v21 = vpop.eup %2139  ;;  %v774_v22 = vadd.f32 %v773_v13, %v772_v7  ;;  %v758_v23 = vmul.f32 1.442695, %v748_v14  ;;  %v715_v28 = vmax.f32 %v713_v11, %v714_v19 }
 0x188   : > { %v1219_v24 = vmax.f32 %v1217_v12, %v1218_v16  ;;  %v777_v26 = vsel %vm689_vm1, %v2816_v21, 0.0  ;;  %v1216_v27 = vmax.f32 %v1214_v10, %v1215_v18  ;;  %v718_v29 = vsel %vm689_vm1, %v2814_v20, -inf }
 0x189   : > { %v775_v30 = vrot.slane %v774_v22, 1  ;;  %v778_v31 = vrot.slane %v777_v26, 4  ;;  %2143 = vpow2.f32 %v758_v23  ;;  %v716_v35 = vrot.slane %v715_v28, 1 }
 0x18a   : > { %v1220_v32 = vrot.slane %v1219_v24, 2  ;;  %v1187_v33 = vpop.f32.mrf.mxu3  ;;  %v1260_v34 = vsub.f32 %v2795_v46, %v1216_v27  ;;  %v719_v36 = vrot.slane %v718_v29, 4 }
 0x18b   : > { %v2826_v37 = vadd.f32 %v2784_v15, %v1187_v33  ;;  %v779_v39 = vadd.f32 %v778_v31, %v777_v26  ;;  %v717_v43 = vmax.f32 %v715_v28, %v716_v35  ;;  %v2832_v45 = vadd.f32 %v775_v30, %v774_v22 }
 0x18c   : > { %v2828_v38 = vpop.eup %2141  ;;  %v1221_v40 = vmax.f32 %v1219_v24, %v1220_v32  ;;  %v1269_v42 = vmul.f32 1.442695, %v1260_v34  ;;  %v720_v44 = vmax.f32 %v718_v29, %v719_v36 }
 0x18d   : > { %v1283_v41 = vsel %vm1202_vm2, %v2828_v38, 0.0  ;;  %v780_v47 = vrot.slane %v779_v39, 2  ;;  %v680_v49 = vpop.f32.mrf.mxu1  ;;  %v749_v50 = vsub.f32 %v2800_v56, %v717_v43  ;;  %v1224_v52 = vsel %vm1202_vm2, %v2826_v37, -inf }
 0x18e   : > { %v1284_v48 = vrot.slane %v1283_v41, 4  ;;  %v1222_v46 = vrot.slane %v1221_v40, 1  ;;  %2145 = vpow2.f32 %v1269_v42  ;;  %v721_v51 = vrot.slane %v720_v44, 2 }
 0x18f   : > { %v2837_v53 = vpop.eup %2143  ;;  %v781_v54 = vadd.f32 %v780_v47, %v779_v39  ;;  %v1225_v59 = vrot.slane %v1224_v52, 4  ;;  %v760_v61 = vmul.f32 1.442695, %v749_v50  ;;  %v2842_v63 = vadd.f32 %v2784_v15, %v680_v49 }
 0x190   : > { %v1285_v55 = vadd.f32 %v1284_v48, %v1283_v41  ;;  %v1223_v58 = vmax.f32 %v1221_v40, %v1222_v46  ;;  %v784_v60 = vsel %vm689_vm1, %v2837_v53, 0.0  ;;  %v722_v62 = vmax.f32 %v720_v44, %v721_v51 }
 0x191   : > { %v782_v0 = vrot.slane %v781_v54, 1  ;;  %v785_v1 = vrot.slane %v784_v60, 4  ;;  %2147 = vpow2.f32 %v760_v61  ;;  %v1226_v5 = vmax.f32 %v1224_v52, %v1225_v59 }
 0x192   : > { %v1286_v56 = vrot.slane %v1285_v55, 2  ;;  %v1261_v2 = vsub.f32 %v2809_v6, %v1223_v58  ;;  %v1190_v3 = vpop.f32.mrf.mxu3  ;;  %v723_v4 = vrot.slane %v722_v62, 1  ;;  %v725_v7 = vsel %vm689_vm1, %v2842_v63, -inf }
 0x193   : > { %2149 = vrcp.f32 %v2832_v45  ;;  %v786_v9 = vadd.f32 %v785_v1, %v784_v60  ;;  %v1227_v13 = vrot.slane %v1226_v5, 2  ;;  %v726_v14 = vrot.slane %v725_v7, 4 }
 0x194   : > { %v1287_v8 = vadd.f32 %v1286_v56, %v1285_v55  ;;  %v1271_v10 = vmul.f32 1.442695, %v1261_v2  ;;  %v2848_v11 = vpop.eup %2145  ;;  %v724_v12 = vmax.f32 %v722_v62, %v723_v4  ;;  %v2851_v16 = vadd.f32 %v2784_v15, %v1190_v3 }
 0x195   : > { %v2853_v6 = vadd.f32 %v782_v0, %v781_v54  ;;  %v787_v18 = vrot.slane %v786_v9, 2  ;;  %v1290_v19 = vsel %vm1202_vm2, %v2848_v11, 0.0  ;;  %v1228_v24 = vmax.f32 %v1226_v5, %v1227_v13  ;;  %v683_v30 = vpop.f32.mrf.mxu1 }
 0x196   : > { %v1288_v17 = vrot.slane %v1287_v8, 1  ;;  %v1291_v22 = vrot.slane %v1290_v19, 4  ;;  %2151 = vpow2.f32 %v1271_v10  ;;  %v750_v23 = vsub.f32 %v2814_v20, %v724_v12 }
 0x197   : > { %v788_v27 = vadd.f32 %v787_v18, %v786_v9  ;;  %v727_v28 = vmax.f32 %v725_v7, %v726_v14  ;;  %v1231_v29 = vsel %vm1202_vm2, %v2851_v16, -inf  ;;  %v2862_v31 = vpop.eup %2147  ;;  %v1229_v34 = vrot.slane %v1228_v24, 1 }
 0x198   : > { %v2858_v26 = vadd.f32 %v1288_v17, %v1287_v8  ;;  %v1292_v32 = vadd.f32 %v1291_v22, %v1290_v19  ;;  %v762_v33 = vmul.f32 1.442695, %v750_v23  ;;  %v1232_v35 = vrot.slane %v1231_v29, 4 }
 0x199   : > { %v2864_v36 = vpop.eup %2149  ;;  %2153 = vrcp.f32 %v2853_v6  ;;  %v789_v20 = vrot.slane %v788_v27, 1  ;;  %v791_v39 = vsel %vm689_vm1, %v2862_v31, 0.0  ;;  %v728_v40 = vrot.slane %v727_v28, 2 }
 0x19a   : > { %v1193_v41 = vpop.f32.mrf.mxu3  ;;  %v1293_v42 = vrot.slane %v1292_v32, 2  ;;  %v792_v43 = vrot.slane %v791_v39, 4  ;;  %2155 = vpow2.f32 %v762_v33  ;;  %v1230_v44 = vmax.f32 %v1228_v24, %v1229_v34 }
 0x19b   : > { %2157 = vrcp.f32 %v2858_v26  ;;  %v729_v47 = vmax.f32 %v727_v28, %v728_v40  ;;  %v1233_v48 = vmax.f32 %v1231_v29, %v1232_v35  ;;  %v2871_v46 = vadd.f32 %v2784_v15, %v683_v30 }
 0x19c   : > { %v2873_v49 = vpop.eup %2151  ;;  %v1294_v50 = vadd.f32 %v1293_v42, %v1292_v32  ;;  %v793_v51 = vadd.f32 %v792_v43, %v791_v39  ;;  %v1262_v52 = vsub.f32 %v2826_v37, %v1230_v44  ;;  %v2877_v54 = vadd.f32 %v2784_v15, %v1193_v41 }
 0x19d   : > { %v2879_v55 = vadd.f32 %v789_v20, %v788_v27  ;;  %v1297_v58 = vsel %vm1202_vm2, %v2873_v49, 0.0  ;;  %v730_v59 = vrot.slane %v729_v47, 1  ;;  %v1234_v60 = vrot.slane %v1233_v48, 2  ;;  %v686_v18 = vpop.f32.mrf.mxu1 }
 0x19e   : > { %v1295_v61 = vrot.slane %v1294_v50, 1  ;;  %v794_v62 = vrot.slane %v793_v51, 2  ;;  %v1298_v0 = vrot.slane %v1297_v58, 4  ;;  %v1273_v56 = vmul.f32 1.442695, %v1262_v52 }
 0x19f   : > { %v2883_v1 = vpop.eup %2153  ;;  %v731_v2 = vmax.f32 %v729_v47, %v730_v59  ;;  %v1235_v3 = vmax.f32 %v1233_v48, %v1234_v60  ;;  %v732_v37 = vsel %vm689_vm1, %v2871_v46, -inf  ;;  %v1238_v4 = vsel %vm1202_vm2, %v2877_v54, -inf }
 0x1a0   : > { %v2889_v5 = vpop.eup %2155  ;;  %v2891_v7 = vadd.f32 %v1295_v61, %v1294_v50  ;;  %v795_v8 = vadd.f32 %v794_v62, %v793_v51  ;;  %v1299_v9 = vadd.f32 %v1298_v0, %v1297_v58  ;;  %2159 = vpow2.f32 %v1273_v56 }
 0x1a1   : > { %v2893_v10 = vpop.eup %2157  ;;  %v798_v12 = vsel %vm689_vm1, %v2889_v5, 0.0  ;;  %v751_v13 = vsub.f32 %v2842_v63, %v731_v2  ;;  %v1236_v14 = vrot.slane %v1235_v3, 1  ;;  %v733_v17 = vrot.slane %v732_v37, 4 }
 0x1a2   : > { %2161 = vrcp.f32 %v2879_v55  ;;  %v796_v19 = vrot.slane %v795_v8, 1  ;;  %v1300_v22 = vrot.slane %v1299_v9, 2  ;;  %v799_v23 = vrot.slane %v798_v12, 4 }
 0x1a3   : > { %v764_v24 = vmul.f32 1.442695, %v751_v13  ;;  %v1237_v27 = vmax.f32 %v1235_v3, %v1236_v14  ;;  %v734_v28 = vmax.f32 %v732_v37, %v733_v17  ;;  %v1239_v29 = vrot.slane %v1238_v4, 4 }
 0x1a4   : > { %2163 = vrcp.f32 %v2891_v7  ;;  %v1301_v30 = vadd.f32 %v1300_v22, %v1299_v9  ;;  %v800_v32 = vadd.f32 %v799_v23, %v798_v12  ;;  %v2901_v33 = vadd.f32 %v2784_v15, %v686_v18 }
 0x1a5   : > { %2165 = vpow2.f32 %v764_v24  ;;  %v1263_v63 = vsub.f32 %v2851_v16, %v1237_v27  ;;  %v735_v34 = vrot.slane %v734_v28, 2  ;;  %v1240_v35 = vmax.f32 %v1238_v4, %v1239_v29 }
 0x1a6   : > { %v2904_v20 = vpop.eup %2159  ;;  %v2906_v39 = vadd.f32 %v796_v19, %v795_v8  ;;  %v1302_v40 = vrot.slane %v1301_v30, 1  ;;  %v801_v41 = vrot.slane %v800_v32, 2  ;;  %v739_v42 = vsel %vm689_vm1, %v2901_v33, -inf }
 0x1a7   : > { %v1304_v43 = vsel %vm1202_vm2, %v2904_v20, 0.0  ;;  %v1275_v44 = vmul.f32 1.442695, %v1263_v63  ;;  %v736_v47 = vmax.f32 %v734_v28, %v735_v34  ;;  %v1241_v48 = vrot.slane %v1240_v35, 2  ;;  %v1196_v63 = vpop.f32.mrf.mxu3 }
 0x1a8   : > { %v2912_v50 = vpop.eup %2161  ;;  %v2914_v16 = vadd.f32 %v1302_v40, %v1301_v30  ;;  %v802_v51 = vadd.f32 %v801_v41, %v800_v32  ;;  %v1305_v52 = vrot.slane %v1304_v43, 4  ;;  %v740_v58 = vrot.slane %v739_v42, 4 }
 0x1a9   : > { %2167 = vpow2.f32 %v1275_v44  ;;  %v737_v59 = vrot.slane %v736_v47, 1  ;;  %v1242_v60 = vmax.f32 %v1240_v35, %v1241_v48  ;;  %v827_v61 = vmul.f32 %v2864_v36, %v2832_v45 }
 0x1aa   : > { %v2918_v62 = vpop.eup %2163  ;;  %2169 = vrcp.f32 %v2906_v39  ;;  %v803_v0 = vrot.slane %v802_v51, 1  ;;  %v1306_v56 = vadd.f32 %v1305_v52, %v1304_v43  ;;  %v741_v2 = vmax.f32 %v739_v42, %v740_v58 }
 0x1ab   : > { %v2921_v3 = vpop.eup %2165  ;;  %2171 = vrcp.f32 %v2914_v16  ;;  %v738_v37 = vmax.f32 %v736_v47, %v737_v59  ;;  %v1243_v4 = vrot.slane %v1242_v60, 1  ;;  %v828_v8 = vsub.f32 1.0, %v827_v61 }
 0x1ac   : > { %v1307_v9 = vrot.slane %v1306_v56, 2  ;;  %v805_v12 = vsel %vm689_vm1, %v2921_v3, 0.0  ;;  %v742_v13 = vrot.slane %v741_v2, 2  ;;  %vm831_vm3 = vweird.f32 %v2832_v45 }
 0x1ad   : > { %v806_v14 = vrot.slane %v805_v12, 4  ;;  %v752_v17 = vsub.f32 %v2871_v46, %v738_v37  ;;  %v1244_v18 = vmax.f32 %v1242_v60, %v1243_v4  ;;  %v829_v19 = vmul.f32 %v2864_v36, %v828_v8 }
 0x1ae   : > { %v2929_v22 = vadd.f32 %v803_v0, %v802_v51  ;;  %v1308_v23 = vadd.f32 %v1307_v9, %v1306_v56  ;;  %v743_v24 = vmax.f32 %v741_v2, %v742_v13  ;;  %vm832_vm4 = vweird.f32 %v2864_v36 }
 0x1af   : > { %v2932_v27 = vpop.eup %2167  ;;  %v807_v28 = vadd.f32 %v806_v14, %v805_v12  ;;  %v766_v29 = vmul.f32 1.442695, %v752_v17  ;;  %v1264_v30 = vsub.f32 %v2877_v54, %v1244_v18  ;;  %v830_v32 = vadd.f32 %v2864_v36, %v829_v19  ;;  %vm2947_vm5 = vmor %vm831_vm3, %vm832_vm4 }
 0x1b0   : > { %v2936_v34 = vpop.eup %2169  ;;  %v1309_v46 = vrot.slane %v1308_v23, 1  ;;  %v1311_v35 = vsel %vm1202_vm2, %v2932_v27, 0.0  ;;  %v744_v40 = vrot.slane %v743_v24, 1  ;;  %v835_v41 = vand.u32 2147483647, %v2832_v45 }
 0x1b1   : > { %v2941_v42 = vpop.eup %2171  ;;  %v808_v43 = vrot.slane %v807_v28, 2  ;;  %v1312_v44 = vrot.slane %v1311_v35, 4  ;;  %2173 = vpow2.f32 %v766_v29  ;;  %v1277_v47 = vmul.f32 1.442695, %v1264_v30 }
 0x1b2   : > { %2175 = vrcp.f32 %v2929_v22  ;;  %v2952_v48 = vadd.f32 %v1309_v46, %v1308_v23  ;;  %v745_v51 = vmax.f32 %v743_v24, %v744_v40  ;;  %v834_v52 = vsel %vm2947_vm5, %v2864_v36, %v830_v32  ;;  %v1199_v32 = vpop.f32.mrf.mxu3 }
 0x1b3   : > { %v809_v58 = vadd.f32 %v808_v43, %v807_v28  ;;  %v1313_v59 = vadd.f32 %v1312_v44, %v1311_v35  ;;  %2177 = vpow2.f32 %v1277_v47  ;;  %v837_v60 = vand.u32 2147483648, %v2832_v45 }
 0x1b4   : > { %v753_v61 = vsub.f32 %v2901_v33, %v745_v51  ;;  %vm836_vm6 = vcmp.eq.f32.partialorder %v835_v41, 8.507059e+37  ;;  %v2960_v0 = vadd.f32 %v2784_v15, %v1196_v63  ;;  %v841_v56 = vmul.f32 %v2883_v1, %v2853_v6 }
 0x1b5   : > { %2179 = vrcp.f32 %v2952_v48  ;;  %v810_v2 = vrot.slane %v809_v58, 1  ;;  %v1314_v37 = vrot.slane %v1313_v59, 2  ;;  %v838_v4 = vor.u32 1.1754944e-38, %v837_v60 }
 0x1b6   : > { %v768_v36 = vmul.f32 1.442695, %v753_v61  ;;  %v1245_v8 = vsel %vm1202_vm2, %v2960_v0, -inf  ;;  %v842_v9 = vsub.f32 1.0, %v841_v56  ;;  %vm846_vm7 = vweird.f32 %v2883_v1 }
 0x1b7   : > { %v2968_v45 = vpop.eup %2173  ;;  %v2970_v33 = vadd.f32 %v810_v2, %v809_v58  ;;  %v1315_v12 = vadd.f32 %v1314_v37, %v1313_v59  ;;  %v839_v13 = vsel %vm836_vm6, %v838_v4, %v834_v52  ;;  %v1246_v14 = vrot.slane %v1245_v8, 4 }
 0x1b8   : > { %v2972_v17 = vpop.eup %2175  ;;  %v812_v18 = vsel %vm689_vm1, %v2968_v45, 0.0  ;;  %2181 = vpow2.f32 %v768_v36  ;;  %v938_v19 = vmul.f32 %v2802_v57, %v839_v13  ;;  %v843_v23 = vmul.f32 %v2883_v1, %v842_v9 }
 0x1b9   : > { %v2978_v24 = vpop.eup %2177  ;;  %v1316_v28 = vrot.slane %v1315_v12, 1  ;;  %v813_v29 = vrot.slane %v812_v18, 4  ;;  %v1247_v30 = vmax.f32 %v1245_v8, %v1246_v14  ;;  %vm845_vm8 = vweird.f32 %v2853_v6 }
 0x1ba   : > { %v1318_v63 = vsel %vm1202_vm2, %v2978_v24, 0.0  ;;  %948 = vperm.xlu0 %2092, %v938_v19   ;;  %v844_v46 = vadd.f32 %v2883_v1, %v843_v23  ;;  %v849_v35 = vand.u32 2147483647, %v2853_v6  ;;  %v851_v57 = vand.u32 2147483648, %v2853_v6  ;;  %vm847_vm9 = vmor %vm845_vm8, %vm846_vm7 }
 0x1bb   : > { %v2986_v40 = vpop.eup %2179  ;;  %2183 = vrcp.f32 %v2970_v33  ;;  %v814_v41 = vadd.f32 %v813_v29, %v812_v18  ;;  %v1319_v43 = vrot.slane %v1318_v63, 4  ;;  %v1248_v44 = vrot.slane %v1247_v30, 2 }
 0x1bc   : > { %v2991_v47 = vadd.f32 %v1316_v28, %v1315_v12  ;;  %v848_v54 = vsel %vm847_vm9, %v2883_v1, %v844_v46  ;;  %v852_v51 = vor.u32 1.1754944e-38, %v851_v57  ;;  %v2995_v52 = vadd.f32 %v2784_v15, %v1199_v32 }
 0x1bd   : > { %v815_v58 = vrot.slane %v814_v41, 2  ;;  %v1320_v6 = vadd.f32 %v1319_v43, %v1318_v63  ;;  %v1249_v59 = vmax.f32 %v1247_v30, %v1248_v44  ;;  %vm850_vm10 = vcmp.eq.f32.partialorder %v849_v35, 8.507059e+37 }
 0x1be   : > { %v2997_v60 = vpop.eup %2181  ;;  %v853_v61 = vsel %vm850_vm10, %v852_v51, %v848_v54  ;;  %v1252_v56 = vsel %vm1202_vm2, %v2995_v52, -inf  ;;  %v1340_v2 = vmul.f32 %v2893_v10, %v2858_v26  ;;  %v2463_v36 = vmov 1  }
 0x1bf   : > { %v816_v37 = vadd.f32 %v815_v58, %v814_v41  ;;  %v1321_v4 = vrot.slane %v1320_v6, 2  ;;  %v819_v1 = vsel %vm689_vm1, %v2997_v60, 0.0  ;;  %v1250_v15 = vrot.slane %v1249_v59, 1  ;;  %2093 = vset.pattern.permute.xlu1 %v2463_v36 }
 0x1c0   : > { %v820_v8 = vrot.slane %v819_v1, 4  ;;  %v939_v9 = vmul.f32 %v2816_v21, %v853_v61  ;;  %v1253_v12 = vrot.slane %v1252_v56, 4  ;;  %v1341_v13 = vsub.f32 1.0, %v1340_v2 }
 0x1c1   : > { %v3007_v14 = vpop.eup %2183  ;;  %v817_v18 = vrot.slane %v816_v37, 1  ;;  %v1322_v19 = vadd.f32 %v1321_v4, %v1320_v6  ;;  %v1251_v23 = vmax.f32 %v1249_v59, %v1250_v15  ;;  %vm1344_vm11 = vweird.f32 %v2858_v26 }
 0x1c2   : > { %v821_v28 = vadd.f32 %v820_v8, %v819_v1  ;;  %953 = vperm.xlu0 %2092, %v939_v9   ;;  %v1254_v29 = vmax.f32 %v1252_v56, %v1253_v12  ;;  %v1342_v30 = vmul.f32 %v2893_v10, %v1341_v13  ;;  %vm1345_vm12 = vweird.f32 %v2893_v10 }
 0x1c3   : > { %v3012_v32 = vadd.f32 %v817_v18, %v816_v37  ;;  %v1323_v63 = vrot.slane %v1322_v19, 1  ;;  %v1265_v21 = vsub.f32 %v2960_v0, %v1251_v23  ;;  %v1348_v46 = vand.u32 2147483647, %v2858_v26  ;;  %vm1346_vm13 = vmor %vm1344_vm11, %vm1345_vm12 }
 0x1c4   : > { %v822_v35 = vrot.slane %v821_v28, 2  ;;  %v1255_v57 = vrot.slane %v1254_v29, 2  ;;  %v1343_v41 = vadd.f32 %v2893_v10, %v1342_v30  ;;  %v1350_v43 = vand.u32 2147483648, %v2858_v26 }
 0x1c5   : > { %2185 = vrcp.f32 %v2991_v47  ;;  %v3019_v44 = vadd.f32 %v1323_v63, %v1322_v19  ;;  %v1279_v54 = vmul.f32 1.442695, %v1265_v21  ;;  %vm1349_vm14 = vcmp.eq.f32.partialorder %v1348_v46, 8.507059e+37 }
 0x1c6   : > { %v823_v51 = vadd.f32 %v822_v35, %v821_v28  ;;  %v1256_v58 = vmax.f32 %v1254_v29, %v1255_v57  ;;  %v1347_v0 = vsel %vm1346_vm13, %v2893_v10, %v1343_v41  ;;  %v1351_v6 = vor.u32 1.1754944e-38, %v1350_v43 }
 0x1c7   : > { %2187 = vrcp.f32 %v3012_v32  ;;  %v855_v59 = vmul.f32 %v2912_v50, %v2879_v55  ;;  %v863_v26 = vand.u32 2147483647, %v2879_v55  ;;  %v865_v1 = vand.u32 2147483648, %v2879_v55 }
 0x1c8   : > { %v824_v61 = vrot.slane %v823_v51, 1  ;;  %2189 = vpow2.f32 %v1279_v54  ;;  %v1257_v56 = vrot.slane %v1256_v58, 1  ;;  %v1352_v2 = vsel %vm1349_vm14, %v1351_v6, %v1347_v0 }
 0x1c9   : > { %v1451_v37 = vmul.f32 %v2828_v38, %v1352_v2  ;;  %v856_v4 = vsub.f32 1.0, %v855_v59  ;;  %2191 = vrcp.f32 %v3019_v44  ;;  %vm859_vm15 = vweird.f32 %v2879_v55 }
 0x1ca   : > { %v1258_v10 = vmax.f32 %v1256_v58, %v1257_v56  ;;  %v1354_v15 = vmul.f32 %v2918_v62, %v2891_v7  ;;  %v3036_v9 = vadd.f32 %v824_v61, %v823_v51  ;;  %vm860_vm1 = vweird.f32 %v2912_v50 }
 0x1cb   : > { %v3034_v8 = vpop.eup %2185  ;;  %1461 = vperm.xlu1 %2093, %v1451_v37   ;;  %v857_v38 = vmul.f32 %v2912_v50, %v856_v4  ;;  %vm1358_vm3 = vweird.f32 %v2891_v7  ;;  %vm3042_vm4 = vcmp.eq.f32.partialorder %v863_v26, 8.507059e+37  ;;  %v866_v18 = vor.u32 1.1754944e-38, %v865_v1  ;;  %vm861_vm6 = vmor %vm859_vm15, %vm860_vm1 }
 0x1cc   : > { %v1266_v12 = vsub.f32 %v2995_v52, %v1258_v10  ;;  %v1355_v19 = vsub.f32 1.0, %v1354_v15  ;;  %vm1359_vm5 = vweird.f32 %v2918_v62  ;;  %v1364_v29 = vand.u32 2147483648, %v2891_v7 }
 0x1cd   : > { %v3046_v23 = vpop.eup %2187  ;;  %v858_v28 = vadd.f32 %v2912_v50, %v857_v38  ;;  %v869_v30 = vmul.f32 %v2936_v34, %v2906_v39  ;;  %v1362_v46 = vand.u32 2147483647, %v2891_v7  ;;  %vm874_vm7 = vweird.f32 %v2936_v34  ;;  %vm1360_vm8 = vmor %vm1358_vm3, %vm1359_vm5 }
 0x1ce   : > { %v3053_v63 = vpop.eup %2189  ;;  %v1281_v52 = vmul.f32 1.442695, %v1266_v12  ;;  %v1356_v21 = vmul.f32 %v2918_v62, %v1355_v19  ;;  %v1365_v41 = vor.u32 1.1754944e-38, %v1364_v29  ;;  %v877_v6 = vand.u32 2147483647, %v2906_v39 }
 0x1cf   : > { %v1325_v35 = vsel %vm1202_vm2, %v3053_v63, 0.0  ;;  %v862_v57 = vsel %vm861_vm6, %v2912_v50, %v858_v28  ;;  %v870_v43 = vsub.f32 1.0, %v869_v30  ;;  %v3063_v54 = vpop.eup %2191  ;;  %v879_v59 = vand.u32 2147483648, %v2906_v39 }
 0x1d0   : > { %v1326_v51 = vrot.slane %v1325_v35, 4  ;;  %2193 = vpow2.f32 %v1281_v52  ;;  %v867_v55 = vsel %vm3042_vm4, %v866_v18, %v862_v57  ;;  %v1357_v58 = vadd.f32 %v2918_v62, %v1356_v21 }
 0x1d1   : > { %v940_v0 = vmul.f32 %v2837_v53, %v867_v55  ;;  %v871_v50 = vmul.f32 %v2936_v34, %v870_v43  ;;  %vm1363_vm9 = vcmp.eq.f32.partialorder %v1362_v46, 8.507059e+37  ;;  %v1368_v2 = vmul.f32 %v2941_v42, %v2914_v16 }
 0x1d2   : > { %v1327_v61 = vadd.f32 %v1326_v51, %v1325_v35  ;;  %v1361_v56 = vsel %vm1360_vm8, %v2918_v62, %v1357_v58  ;;  %vm873_vm10 = vweird.f32 %v2906_v39  ;;  %vm878_vm11 = vcmp.eq.f32.partialorder %v877_v6, 8.507059e+37 }
 0x1d3   : > { %958 = vperm.xlu2 %2094, %v940_v0   ;;  %v1366_v53 = vsel %vm1363_vm9, %v1365_v41, %v1361_v56  ;;  %v872_v37 = vadd.f32 %v2936_v34, %v871_v50  ;;  %vm875_vm12 = vmor %vm873_vm10, %vm874_vm7  ;;  %v880_v26 = vor.u32 1.1754944e-38, %v879_v59  ;;  %v1369_v1 = vsub.f32 1.0, %v1368_v2 }
 0x1d4   : > { %v1328_v7 = vrot.slane %v1327_v61, 2  ;;  %v1452_v4 = vmul.f32 %v2848_v11, %v1366_v53  ;;  %v1376_v10 = vand.u32 2147483647, %v2914_v16  ;;  %v1378_v15 = vand.u32 2147483648, %v2914_v16 }
 0x1d5   : > { %v876_v62 = vsel %vm875_vm12, %v2936_v34, %v872_v37  ;;  %v1382_v38 = vmul.f32 %v2986_v40, %v2952_v48  ;;  %2195 = vrcp.f32 %v3036_v9  ;;  %v1370_v39 = vmul.f32 %v2941_v42, %v1369_v1 }
 0x1d6   : > { %v3089_v12 = vpop.eup %2193  ;;  %1466 = vperm.xlu1 %2093, %v1452_v4   ;;  %v881_v11 = vsel %vm878_vm11, %v880_v26, %v876_v62  ;;  %vm1373_vm13 = vweird.f32 %v2941_v42  ;;  %v1329_v13 = vadd.f32 %v1328_v7, %v1327_v61  ;;  %vm1372_vm14 = vweird.f32 %v2914_v16 }
 0x1d7   : > { %v1332_v34 = vsel %vm1202_vm2, %v3089_v12, 0.0  ;;  %v941_v18 = vmul.f32 %v2862_v31, %v881_v11  ;;  %v1371_v28 = vadd.f32 %v2941_v42, %v1370_v39  ;;  %vm1377_vm15 = vcmp.eq.f32.partialorder %v1376_v10, 8.507059e+37  ;;  %vm1374_vm1 = vmor %vm1372_vm14, %vm1373_vm13 }
 0x1d8   : > { %v1333_v19 = vrot.slane %v1332_v34, 4  ;;  %v1383_v29 = vsub.f32 1.0, %v1382_v38  ;;  %v1379_v30 = vor.u32 1.1754944e-38, %v1378_v15  ;;  %v1390_v52 = vand.u32 2147483647, %v2952_v48 }
 0x1d9   : > { %963 = vperm.xlu0 %2092, %v941_v18   ;;  %v1392_v21 = vand.u32 2147483648, %v2952_v48  ;;  %v883_v46 = vmul.f32 %v2972_v17, %v2929_v22  ;;  %v1375_v31 = vsel %vm1374_vm1, %v2941_v42, %v1371_v28  ;;  %vm1387_vm2 = vweird.f32 %v2986_v40 }
 0x1da   : > { %v1334_v35 = vadd.f32 %v1333_v19, %v1332_v34  ;;  %v1384_v16 = vmul.f32 %v2986_v40, %v1383_v29  ;;  %v1330_v57 = vrot.slane %v1329_v13, 1  ;;  %v1380_v41 = vsel %vm1377_vm15, %v1379_v30, %v1375_v31 }
 0x1db   : > { %2095 = vset.pattern.permute.xlu2 %v2463_v36  ;;  %vm1386_vm3 = vweird.f32 %v2952_v48  ;;  %v884_v43 = vsub.f32 1.0, %v883_v46  ;;  %v3108_v51 = vpop.eup %2195  ;;  %v1453_v58 = vmul.f32 %v2873_v49, %v1380_v41  ;;  %vm1391_vm4 = vcmp.eq.f32.partialorder %v1390_v52, 8.507059e+37 }
 0x1dc   : > { %v1335_v55 = vrot.slane %v1334_v35, 2  ;;  %v1385_v0 = vadd.f32 %v2986_v40, %v1384_v16  ;;  %vm1388_vm5 = vmor %vm1386_vm3, %vm1387_vm2  ;;  %v1393_v42 = vor.u32 1.1754944e-38, %v1392_v21  ;;  %vm888_vm6 = vweird.f32 %v2972_v17 }
 0x1dd   : > { %v885_v50 = vmul.f32 %v2972_v17, %v884_v43  ;;  %v891_v6 = vand.u32 2147483647, %v2929_v22  ;;  %1471 = vperm.xlu2 %2095, %v1453_v58   ;;  %v893_v61 = vand.u32 2147483648, %v2929_v22  ;;  %v1396_v49 = vmul.f32 %v3034_v8, %v2991_v47 }
 0x1de   : > { %v1336_v59 = vadd.f32 %v1335_v55, %v1334_v35  ;;  %v1389_v48 = vsel %vm1388_vm5, %v2986_v40, %v1385_v0  ;;  %v3119_v56 = vadd.f32 %v1330_v57, %v1329_v13  ;;  %vm887_vm7 = vweird.f32 %v2929_v22 }
 0x1df   : > { %v1394_v2 = vsel %vm1391_vm4, %v1393_v42, %v1389_v48  ;;  %v886_v53 = vadd.f32 %v2972_v17, %v885_v50  ;;  %vm889_vm8 = vmor %vm887_vm7, %vm888_vm6  ;;  %v894_v4 = vor.u32 1.1754944e-38, %v893_v61  ;;  %v1397_v26 = vsub.f32 1.0, %v1396_v49 }
 0x1e0   : > { %v1337_v37 = vrot.slane %v1336_v59, 1  ;;  %v1454_v7 = vmul.f32 %v2904_v20, %v1394_v2  ;;  %vm892_vm9 = vcmp.eq.f32.partialorder %v891_v6, 8.507059e+37  ;;  %v1404_v1 = vand.u32 2147483647, %v2991_v47 }
 0x1e1   : > { %v890_v40 = vsel %vm889_vm8, %v2972_v17, %v886_v53  ;;  %2098 = vset.pattern.permute.xlu0 %v2463_v36  ;;  %v1406_v62 = vand.u32 2147483648, %v2991_v47  ;;  %v1398_v15 = vmul.f32 %v3034_v8, %v1397_v26  ;;  %vm1401_vm10 = vweird.f32 %v3034_v8 }
 0x1e2   : > { %1476 = vperm.xlu1 %2093, %v1454_v7   ;;  %v895_v10 = vsel %vm892_vm9, %v894_v4, %v890_v40  ;;  %v897_v20 = vmul.f32 %v3007_v14, %v2970_v33  ;;  %2197 = vrcp.f32 %v3119_v56  ;;  %v3133_v22 = vadd.f32 %v1337_v37, %v1336_v59 }
 0x1e3   : > { %v942_v17 = vmul.f32 %v2889_v5, %v895_v10  ;;  %vm1400_vm11 = vweird.f32 %v2991_v47  ;;  %v1399_v38 = vadd.f32 %v3034_v8, %v1398_v15  ;;  %vm1405_vm12 = vcmp.eq.f32.partialorder %v1404_v1, 8.507059e+37 }
 0x1e4   : > { %v1407_v11 = vor.u32 1.1754944e-38, %v1406_v62  ;;  %v898_v39 = vsub.f32 1.0, %v897_v20  ;;  %vm1402_vm13 = vmor %vm1400_vm11, %vm1401_vm10  ;;  %vm901_vm14 = vweird.f32 %v2970_v33  ;;  %v905_v13 = vand.u32 2147483647, %v2970_v33 }
 0x1e5   : > { %v907_v34 = vand.u32 2147483648, %v2970_v33  ;;  %v1410_v18 = vmul.f32 %v3063_v54, %v3019_v44  ;;  %2096 = vset.pattern.permute.xlu2 %v2462_v25  ;;  %v1403_v5 = vsel %vm1402_vm13, %v3034_v8, %v1399_v38  ;;  %vm902_vm15 = vweird.f32 %v3007_v14 }
 0x1e6   : > { %v899_v47 = vmul.f32 %v3007_v14, %v898_v39  ;;  %v1418_v19 = vand.u32 2147483647, %v3019_v44  ;;  %2199 = vrcp.f32 %v3133_v22  ;;  %968 = vperm.xlu2 %2096, %v942_v17   ;;  %v1408_v28 = vsel %vm1405_vm12, %v1407_v11, %v1403_v5  ;;  %vm903_vm3 = vmor %vm901_vm14, %vm902_vm15 }
 0x1e7   : > { %v1411_v29 = vsub.f32 1.0, %v1410_v18  ;;  %vm1414_vm1 = vweird.f32 %v3019_v44  ;;  %v1455_v30 = vmul.f32 %v2932_v27, %v1408_v28  ;;  %vm1415_vm2 = vweird.f32 %v3063_v54 }
 0x1e8   : > { %v900_v52 = vadd.f32 %v3007_v14, %v899_v47  ;;  %v1420_v8 = vand.u32 2147483648, %v3019_v44  ;;  %v3154_v21 = vpop.eup %2197  ;;  %vm906_vm4 = vcmp.eq.f32.partialorder %v905_v13, 8.507059e+37  ;;  %v908_v46 = vor.u32 1.1754944e-38, %v907_v34  ;;  %vm1416_vm7 = vmor %vm1414_vm1, %vm1415_vm2 }
 0x1e9   : > { %v1412_v35 = vmul.f32 %v3063_v54, %v1411_v29  ;;  %v911_v31 = vmul.f32 %v3046_v23, %v3012_v32  ;;  %1481 = vperm.xlu0 %2098, %v1455_v30   ;;  %vm3163_vm5 = vcmp.eq.f32.partialorder %v1418_v19, 8.507059e+37  ;;  %vm915_vm6 = vweird.f32 %v3012_v32  ;;  %v1617_v19 = vld [vmem:[#allocation8 + $0x38] sm:$0xff] }
 0x1ea   : > { %2097 = vset.pattern.permute.xlu1 %v2462_v25  ;;  %v904_v27 = vsel %vm903_vm3, %v3007_v14, %v900_v52  ;;  %v919_v33 = vand.u32 2147483647, %v3012_v32  ;;  %v925_v55 = vmul.f32 %v3108_v51, %v3036_v9  ;;  %v1421_v14 = vor.u32 1.1754944e-38, %v1420_v8  ;;  %1648 = vmatpush.msra.mxu1 %v1617_v19  ;;  %v1616_v52 = vld [vmem:[#allocation8 + $0x30] sm:$0xff] }
 0x1eb   : > { %v909_v57 = vsel %vm906_vm4, %v908_v46, %v904_v27  ;;  %v1413_v41 = vadd.f32 %v3063_v54, %v1412_v35  ;;  %v912_v43 = vsub.f32 1.0, %v911_v31  ;;  %vm916_vm8 = vweird.f32 %v3046_v23  ;;  %v1565_v8 = vld [vmem:[#allocation8 + $0x10] sm:$0xff]  ;;  %v2211_v31 = vld [vmem:[%s2677_s19 + $0x8] sm:$0xff] }
 0x1ec   : > { %v943_v58 = vmul.f32 %v2921_v3, %v909_v57  ;;  %v921_v0 = vand.u32 2147483648, %v3012_v32  ;;  %v2200_v42 = vpop.eup %2199  ;;  %vm3181_vm9 = vcmp.eq.f32.partialorder %v919_v33, 8.507059e+37  ;;  %v926_v3 = vsub.f32 1.0, %v925_v55  ;;  %vm917_vm11 = vmor %vm915_vm6, %vm916_vm8  ;;  %1649 = vmatpush.msra.mxu1 %v1616_v52  ;;  %v2210_v35 = vld [vmem:[%s2677_s19 + $0x10] sm:$0xff]  ;;  %v1615_v57 = vld [vmem:[#allocation8 + $0x28] sm:$0xff] }
 0x1ed   : > { %v1417_v50 = vsel %vm1416_vm7, %v3063_v54, %v1413_v41  ;;  %v913_v6 = vmul.f32 %v3046_v23, %v912_v43  ;;  %vm930_vm10 = vweird.f32 %v3108_v51  ;;  %v935_v48 = vand.u32 2147483648, %v3036_v9 }
 0x1ee   : > { %973 = vperm.xlu1 %2097, %v943_v58   ;;  %v1422_v44 = vsel %vm3163_vm5, %v1421_v14, %v1417_v50  ;;  %v1424_v61 = vmul.f32 %v3154_v21, %v3119_v56  ;;  %2099 = vset.pattern.permute.xlu2 %v2463_v36  ;;  %v927_v2 = vmul.f32 %v3108_v51, %v926_v3  ;;  %v933_v53 = vand.u32 2147483647, %v3036_v9 }
 0x1ef   : > { %v1456_v54 = vmul.f32 %v2978_v24, %v1422_v44  ;;  %v914_v49 = vadd.f32 %v3046_v23, %v913_v6  ;;  %v922_v37 = vor.u32 1.1754944e-38, %v921_v0  ;;  %vm929_vm12 = vweird.f32 %v3036_v9  ;;  %1650 = vmatpush.msra.mxu1 %v1615_v57  ;;  %v2212_v0 = vld [vmem:[%s2677_s19 + $0x18] sm:$0xff]  ;;  %v2213_v6 = vld [vmem:[%s2684_s6 + $0x10] sm:$0xff]  ;;  %v2214_v44 = vld [vmem:[%s2684_s6 + $0x8] sm:$0xff] }
 0x1f0   : > { %v936_v7 = vor.u32 1.1754944e-38, %v935_v48  ;;  %v1425_v4 = vsub.f32 1.0, %v1424_v61  ;;  %v928_v24 = vadd.f32 %v3108_v51, %v927_v2  ;;  %v1432_v40 = vand.u32 2147483647, %v3119_v56  ;;  %vm931_vm13 = vmor %vm929_vm12, %vm930_vm10 }
 0x1f1   : > { %1486 = vperm.xlu2 %2099, %v1456_v54   ;;  %v918_v26 = vsel %vm917_vm11, %v3046_v23, %v914_v49  ;;  %v1434_v1 = vand.u32 2147483648, %v3119_v56  ;;  %2100 = vset.pattern.permute.xlu0 %v2462_v25  ;;  %vm1429_vm14 = vweird.f32 %v3154_v21  ;;  %v1438_v9 = vmul.f32 %v2200_v42, %v3133_v22  ;;  %v2215_v54 = vld [vmem:[%s2684_s6] sm:$0xff] }
 0x1f2   : > { %v923_v62 = vsel %vm3181_vm9, %v922_v37, %v918_v26  ;;  %v1426_v32 = vmul.f32 %v3154_v21, %v1425_v4  ;;  %v932_v23 = vsel %vm931_vm13, %v3108_v51, %v928_v24  ;;  %vm934_vm15 = vcmp.eq.f32.partialorder %v933_v53, 8.507059e+37  ;;  %v1564_v26 = vld [vmem:[#allocation8 + $0x8] sm:$0xff] }
 0x1f3   : > { %vm1428_vm1 = vweird.f32 %v3119_v56  ;;  %v944_v10 = vmul.f32 %v2968_v45, %v923_v62  ;;  %v937_v15 = vsel %vm934_vm15, %v936_v7, %v932_v23  ;;  %v1439_v25 = vsub.f32 1.0, %v1438_v9 }
 0x1f4   : > { %v1427_v20 = vadd.f32 %v3154_v21, %v1426_v32  ;;  %v945_v17 = vmul.f32 %v2997_v60, %v937_v15  ;;  %vm1430_vm2 = vmor %vm1428_vm1, %vm1429_vm14  ;;  %vm1433_vm3 = vcmp.eq.f32.partialorder %v1432_v40, 8.507059e+37  ;;  %v1435_v38 = vor.u32 1.1754944e-38, %v1434_v1  ;;  %v2216_v40 = vld [vmem:[%s2677_s19 + $0x20] sm:$0xff]  ;;  %v2217_v15 = vld [vmem:[%s2684_s6 + $0x18] sm:$0xff] }
 0x1f5   : > { %v1448_v11 = vand.u32 2147483648, %v3133_v22  ;;  %v1440_v51 = vmul.f32 %v2200_v42, %v1439_v25  ;;  %vm1443_vm4 = vweird.f32 %v2200_v42  ;;  %v1446_v56 = vand.u32 2147483647, %v3133_v22 }
 0x1f6   : > { %978 = vperm.xlu1 %2097, %v944_v10   ;;  %v1431_v39 = vsel %vm1430_vm2, %v3154_v21, %v1427_v20  ;;  %983 = vperm.xlu0 %2100, %v945_v17   ;;  %vm1442_vm5 = vweird.f32 %v3133_v22  ;;  %v2209_v21 = vld [vmem:[%s2677_s19] sm:$0xff]  ;;  %vm1576_vm8 = vcmask 1041409   ;;  %vm1578_vm9 = vcmask 1042434  }
 0x1f7   : > { %v1436_v45 = vsel %vm1433_vm3, %v1435_v38, %v1431_v39  ;;  %v1441_v34 = vadd.f32 %v2200_v42, %v1440_v51  ;;  %vm1444_vm6 = vmor %vm1442_vm5, %vm1443_vm4  ;;  %v1449_v60 = vor.u32 1.1754944e-38, %v1448_v11  ;;  %vm1447_vm7 = vcmp.eq.f32.partialorder %v1446_v56, 8.507059e+37  ;;  %v2218_v39 = vld [vmem:[%s2684_s6 + $0x28] sm:$0xff] }
 0x1f8   : > { %v1457_v13 = vmul.f32 %v3053_v63, %v1436_v45  ;;  %v1566_v63 = vld [vmem:[#allocation8 + $0x18] sm:$0xff]  ;;  %vm1580_vm10 = vcmask 1043459   ;;  %vm1582_vm11 = vcmask 1044484   ;;  %vm1584_vm12 = vcmask 1045509  }
 0x1f9   : > { %v1445_v18 = vsel %vm1444_vm6, %v2200_v42, %v1441_v34  ;;  %1604 = vmatpush.msrb.mxu0 %v1566_v63  ;;  %v2219_v34 = vld [vmem:[%s2684_s6 + $0x20] sm:$0xff]  ;;  %vm1588_vm13 = vcmask 1047559   ;;  %vm1586_vm14 = vcmask 1046534   ;;  %vm1712_vm15 = vcmask 523264  }
 0x1fa   : > { %1491 = vperm.xlu2 %2099, %v1457_v13   ;;  %v1450_v5 = vsel %vm1447_vm7, %v1449_v60, %v1445_v18 }
 0x1fb   : > { %v1458_v47 = vmul.f32 %v3089_v12, %v1450_v5  ;;  %1605 = vmatpush.msrb.mxu0 %v1565_v8 }
 0x1fd   : > { %1606 = vmatpush.msrb.mxu0 %v1564_v26 }
 0x1fe   : > { %2101 = vset.pattern.permute.xlu1 %v2463_v36  ;;  %2102 = vset.pattern.permute.xlu0 %v2463_v36 }
 0x1ff   : > { %1496 = vperm.xlu1 %2101, %v1458_v47  }
 0x22c   : > { %v949_v28 = vpop.permute.xlu0 %948 }
 0x22d   : > { %v959_v22 = vpop.permute.xlu2 %958  ;;  %v986_v46 = vmul.f32 %v2209_v21, %v949_v28  ;;  %v1563_v28 = vld [vmem:[#allocation8] sm:$0xff] }
 0x22e   : > { %v988_v36 = vmul.f32 %v2210_v35, %v959_v22  ;;  %v1614_v22 = vld [vmem:[#allocation8 + $0x20] sm:$0xff]  ;;  %1607 = vmatpush.msrb.mxu0 %v1563_v28 }
 0x22f   : > { %v994_v41 = vsel %vm547_vm0, %v986_v46, 0.0  ;;  %1651 = vmatpush.msra.mxu1 %v1614_v22 }
 0x230   : > { %v1008_v55 = vsel %vm547_vm0, %v988_v36, 0.0  ;;  %v995_v14 = vrot.slane %v994_v41, 4 }
 0x231   : > { %v1009_v50 = vrot.slane %v1008_v55, 4 }
 0x232   : > { %v996_v61 = vadd.f32 %v995_v14, %v994_v41  ;;  %v1661_v41 = vld [vmem:[%s3336_s8 + $0x18] sm:$0xff]  ;;  %v2221_v14 = vld [vmem:[%s2684_s6 + $0x30] sm:$0xff] }
 0x233   : > { %v1010_v7 = vadd.f32 %v1009_v50, %v1008_v55  ;;  %1681 = vmatpush.msrb.mxu2 %v1661_v41 }
 0x234   : > { %v954_v12 = vpop.permute.xlu0 %953  ;;  %v997_v9 = vrot.slane %v996_v61, 2 }
 0x235   : > { %v987_v27 = vmul.f32 %v2211_v31, %v954_v12  ;;  %v1011_v25 = vrot.slane %v1010_v7, 2  ;;  %v2220_v31 = vld [vmem:[%s2677_s19 + $0x28] sm:$0xff] }
 0x236   : > { %v998_v18 = vadd.f32 %v997_v9, %v996_v61 }
 0x237   : > { %v1472_v29 = vpop.permute.xlu2 %1471  ;;  %v1001_v58 = vsel %vm547_vm0, %v987_v27, 0.0 }
 0x238   : > { %v1501_v59 = vmul.f32 %v2213_v6, %v1472_v29  ;;  %v1002_v3 = vrot.slane %v1001_v58, 4  ;;  %v1012_v29 = vadd.f32 %v1011_v25, %v1010_v7 }
 0x23a   : > { %v1521_v4 = vsel %vm547_vm0, %v1501_v59, 0.0  ;;  %v1003_v24 = vadd.f32 %v1002_v3, %v1001_v58  ;;  %v1013_v50 = vrot.slane %v1012_v29, 1 }
 0x23b   : > { %v1522_v23 = vrot.slane %v1521_v4, 4 }
 0x23c   : > { %v1004_v17 = vrot.slane %v1003_v24, 2 }
 0x23d   : > { %v1462_v30 = vpop.permute.xlu1 %1461  ;;  %v1523_v5 = vadd.f32 %v1522_v23, %v1521_v4 }
 0x23e   : > { %v1499_v49 = vmul.f32 %v2215_v54, %v1462_v30  ;;  %v1005_v30 = vadd.f32 %v1004_v17, %v1003_v24  ;;  %v1014_v24 = vadd.f32 %v1013_v50, %v1012_v29 }
 0x240   : > { %v969_v16 = vpop.permute.xlu2 %968  ;;  %v1507_v10 = vsel %vm547_vm0, %v1499_v49, 0.0  ;;  %v1006_v6 = vrot.slane %v1005_v30, 1 }
 0x241   : > { %v990_v1 = vmul.f32 %v2216_v40, %v969_v16  ;;  %v1508_v45 = vrot.slane %v1507_v10, 4  ;;  %v999_v16 = vrot.slane %v998_v18, 1 }
 0x242   : > { %v1007_v40 = vadd.f32 %v1006_v6, %v1005_v30 }
 0x243   : > { %v1022_v38 = vsel %vm547_vm0, %v990_v1, 0.0  ;;  %v1509_v46 = vadd.f32 %v1508_v45, %v1507_v10 }
 0x244   : > { %v1023_v19 = vrot.slane %v1022_v38, 4 }
 0x246   : > { %v1024_v55 = vadd.f32 %v1023_v19, %v1022_v38 }
 0x248   : > { %v1467_v33 = vpop.permute.xlu1 %1466  ;;  %v1025_v7 = vrot.slane %v1024_v55, 2 }
 0x249   : > { %v1500_v48 = vmul.f32 %v2214_v44, %v1467_v33  ;;  %v1524_v33 = vrot.slane %v1523_v5, 2  ;;  %v1659_v44 = vld [vmem:[%s3336_s8 + $0x8] sm:$0xff] }
 0x24b   : > { %v964_v43 = vpop.permute.xlu0 %963  ;;  %v1487_v53 = vpop.permute.xlu2 %1486  ;;  %v1514_v62 = vsel %vm547_vm0, %v1500_v48, 0.0  ;;  %v1510_v48 = vrot.slane %v1509_v46, 2  ;;  %v1525_v49 = vadd.f32 %v1524_v33, %v1523_v5 }
 0x24c   : > { %v989_v42 = vmul.f32 %v2212_v0, %v964_v43  ;;  %v1515_v11 = vrot.slane %v1514_v62, 4  ;;  %v1504_v51 = vmul.f32 %v2218_v39, %v1487_v53  ;;  %v1660_v43 = vld [vmem:[%s3336_s8 + $0x10] sm:$0xff]  ;;  %v2223_v39 = vld [vmem:[%s2677_s19 + $0x38] sm:$0xff] }
 0x24d   : > { %1682 = vmatpush.msrb.mxu2 %v1660_v43  ;;  %v1511_v9 = vadd.f32 %v1510_v48, %v1509_v46  ;;  %v1526_v17 = vrot.slane %v1525_v49, 1 }
 0x24e   : > { %v1015_v2 = vsel %vm547_vm0, %v989_v42, 0.0  ;;  %v1516_v52 = vadd.f32 %v1515_v11, %v1514_v62  ;;  %v1542_v8 = vsel %vm547_vm0, %v1504_v51, 0.0 }
 0x24f   : > { %v1016_v32 = vrot.slane %v1015_v2, 4  ;;  %v1543_v58 = vrot.slane %v1542_v8, 4  ;;  %1683 = vmatpush.msrb.mxu2 %v1659_v44  ;;  %v1512_v19 = vrot.slane %v1511_v9, 1 }
 0x250   : > { %v1517_v59 = vrot.slane %v1516_v52, 2 }
 0x251   : > { %v1017_v13 = vadd.f32 %v1016_v32, %v1015_v2  ;;  %v1544_v4 = vadd.f32 %v1543_v58, %v1542_v8 }
 0x252   : > { %v1518_v1 = vadd.f32 %v1517_v59, %v1516_v52 }
 0x253   : > { %v1018_v35 = vrot.slane %v1017_v13, 2  ;;  %v1545_v45 = vrot.slane %v1544_v4, 2 }
 0x254   : > { %v1477_v37 = vpop.permute.xlu1 %1476  ;;  %v1492_v12 = vpop.permute.xlu2 %1491 }
 0x255   : > { %v1502_v20 = vmul.f32 %v2217_v15, %v1477_v37  ;;  %v1505_v0 = vmul.f32 %v2221_v14, %v1492_v12  ;;  %v1019_v61 = vadd.f32 %v1018_v35, %v1017_v13  ;;  %v1000_v37 = vadd.f32 %v999_v16, %v998_v18  ;;  %v2222_v15 = vld [vmem:[%s2677_s19 + $0x30] sm:$0xff]  ;;  %s2391_s19 = scalar_lea.hbm %s2390_s16, 16 }
 0x256   : > { %v1519_v18 = vrot.slane %v1518_v1, 1  ;;  %v1546_v12 = vadd.f32 %v1545_v45, %v1544_v4  ;;  %v1527_v35 = vadd.f32 %v1526_v17, %v1525_v49  ;;  %v1513_v16 = vadd.f32 %v1512_v19, %v1511_v9  ;;  %v1658_v45 = vld [vmem:[%s3336_s8] sm:$0xff]  ;;  %v1701_v19 = vld [vmem:[#allocation10 + $0x58] sm:$0xff]  ;;  %p2392_p1 = scmp.ne.s32.totalorder %s2390_s16, %s2391_s19  ;;  %p2397_p10 = scmp.lt.s32.totalorder %s2395_s2, %s2391_s19 }
 0x257   : > { %v1528_v47 = vsel %vm547_vm0, %v1502_v20, 0.0  ;;  %v1549_v26 = vsel %vm547_vm0, %v1505_v0, 0.0  ;;  %v1020_v23 = vrot.slane %v1019_v61, 1  ;;  %v2224_v0 = vld [vmem:[%s2684_s6 + $0x38] sm:$0xff]  ;;  %1684 = vmatpush.msrb.mxu2 %v1658_v45 }
 0x258   : > { %v1529_v36 = vrot.slane %v1528_v47, 4  ;;  %v1550_v38 = vrot.slane %v1549_v26, 4  ;;  %v1547_v6 = vrot.slane %v1546_v12, 1  ;;  %p2393_p4 = pnand %p2392_p1, %p2618_p7  ;;  %p2398_p2 = por %p2397_p10, %p2396_p9 }
 0x25a   : > { %v1530_v54 = vadd.f32 %v1529_v36, %v1528_v47  ;;  %v1551_v29 = vadd.f32 %v1550_v38, %v1549_v26  ;;  %v1520_v36 = vadd.f32 %v1519_v18, %v1518_v1  ;;  %v1705_v18 = vld [vmem:[#allocation10 + $0x78] sm:$0xff]  ;;  %p2394_p8 = pneg %p2393_p4 }
 0x25b   : > { %v1482_v56 = vpop.permute.xlu0 %1481  ;;  %1744 = vmatpush.msra.mxu0 %v1705_v18 }
 0x25c   : > { %v1503_v60 = vmul.f32 %v2219_v34, %v1482_v56  ;;  %v1531_v10 = vrot.slane %v1530_v54, 2  ;;  %v1026_v56 = vadd.f32 %v1025_v7, %v1024_v55  ;;  %v1552_v55 = vrot.slane %v1551_v29, 2  ;;  %p2399_p11 = pnand %p2398_p2, %p2394_p8 }
 0x25d   : > { %v1627_v44 = vsel %vm1576_vm8, %v1520_v36, %v1513_v16 }
 0x25e   : > { %v1535_v63 = vsel %vm547_vm0, %v1503_v60, 0.0  ;;  %v1577_v60 = vsel %vm1576_vm8, %v1007_v40, %v1000_v37  ;;  %v1532_v22 = vadd.f32 %v1531_v10, %v1530_v54  ;;  %v1027_v8 = vrot.slane %v1026_v56, 1 }
 0x25f   : > { %v1536_v57 = vrot.slane %v1535_v63, 4  ;;  %v1553_v37 = vadd.f32 %v1552_v55, %v1551_v29  ;;  %v1628_v1 = vsel %vm1578_vm9, %v1527_v35, %v1627_v44  ;;  %v1697_v29 = vld [vmem:[#allocation10 + $0x38] sm:$0xff]  ;;  %v2104_v55 = vld [vmem:[%s3337_s9] ss:$0 sm:$0xff] }
 0x260   : > { %v974_v21 = vpop.permute.xlu1 %973  ;;  %v1028_v50 = vadd.f32 %v1027_v8, %v1026_v56  ;;  %v533_v8 = vld [vmem:[%s3335_s7] sm:$0x3] }
 0x261   : > { %v991_v27 = vmul.f32 %v2220_v31, %v974_v21  ;;  %v1537_v2 = vadd.f32 %v1536_v57, %v1535_v63  ;;  %v1021_v63 = vadd.f32 %v1020_v23, %v1019_v61  ;;  %v1579_v31 = vsel %vm1578_vm9, %v1014_v24, %v1577_v60  ;;  %v1700_v60 = vld [vmem:[#allocation10 + $0x50] sm:$0xff] }
 0x262   : > { %v1533_v57 = vrot.slane %v1532_v22, 1  ;;  %v1554_v10 = vrot.slane %v1553_v37, 1 }
 0x263   : > { %v1029_v42 = vsel %vm547_vm0, %v991_v27, 0.0  ;;  %v1538_v11 = vrot.slane %v1537_v2, 2  ;;  %v1581_v33 = vsel %vm1580_vm10, %v1021_v63, %v1579_v31  ;;  %v1696_v63 = vld [vmem:[#allocation10 + $0x30] sm:$0xff] }
 0x264   : > { %v1030_v3 = vrot.slane %v1029_v42, 4  ;;  %v1534_v54 = vadd.f32 %v1533_v57, %v1532_v22  ;;  %v1699_v22 = vld [vmem:[#allocation10 + $0x48] sm:$0xff] }
 0x265   : > { %v1539_v30 = vadd.f32 %v1538_v11, %v1537_v2  ;;  %v1555_v11 = vadd.f32 %v1554_v10, %v1553_v37  ;;  %v1695_v57 = vld [vmem:[#allocation10 + $0x28] sm:$0xff] }
 0x266   : > { %v1031_v53 = vadd.f32 %v1030_v3, %v1029_v42 }
 0x267   : > { %v1540_v58 = vrot.slane %v1539_v30, 1 }
 0x268   : > { %v1032_v62 = vrot.slane %v1031_v53, 2  ;;  %v979_v32 = vpop.permute.xlu1 %978  ;;  %v984_v25 = vpop.permute.xlu0 %983 }
 0x269   : > { %v992_v20 = vmul.f32 %v2222_v15, %v979_v32  ;;  %v993_v51 = vmul.f32 %v2223_v39, %v984_v25  ;;  %v1541_v7 = vadd.f32 %v1540_v58, %v1539_v30  ;;  %v1629_v32 = vsel %vm1580_vm10, %v1534_v54, %v1628_v1  ;;  %v1692_v30 = vld [vmem:[#allocation10 + $0x10] sm:$0xff] }
 0x26a   : > { %v1033_v13 = vadd.f32 %v1032_v62, %v1031_v53  ;;  %v1583_v53 = vsel %vm1582_vm11, %v1028_v50, %v1581_v33 }
 0x26b   : > { %v1036_v34 = vsel %vm547_vm0, %v992_v20, 0.0  ;;  %v1043_v47 = vsel %vm547_vm0, %v993_v51, 0.0  ;;  %v1630_v15 = vsel %vm1582_vm11, %v1541_v7, %v1629_v32  ;;  %v1548_v20 = vadd.f32 %v1547_v6, %v1546_v12 }
 0x26c   : > { %v1037_v5 = vrot.slane %v1036_v34, 4  ;;  %v1044_v28 = vrot.slane %v1043_v47, 4  ;;  %v1034_v21 = vrot.slane %v1033_v13, 1  ;;  %v1567_v12 = vperm.slane %v533_v8, 0 }
 0x26d   : > { %v1631_v38 = vsel %vm1584_vm12, %v1548_v20, %v1630_v15 }
 0x26e   : > { %v1038_v52 = vadd.f32 %v1037_v5, %v1036_v34  ;;  %v1045_v46 = vadd.f32 %v1044_v28, %v1043_v47  ;;  %v1035_v59 = vadd.f32 %v1034_v21, %v1033_v13  ;;  %v1632_v51 = vsel %vm1586_vm14, %v1555_v11, %v1631_v38  ;;  %v1704_v13 = vld [vmem:[#allocation10 + $0x70] sm:$0xff]  ;;  %v1702_v34 = vld [vmem:[#allocation10 + $0x60] sm:$0xff]  ;;  %v1703_v5 = vld [vmem:[#allocation10 + $0x68] sm:$0xff] }
 0x26f   : > { %1724 = vmatpush.msrb.mxu3 %v1704_v13  ;;  %v1698_v47 = vld [vmem:[#allocation10 + $0x40] sm:$0xff]  ;;  %1745 = vmatpush.msra.mxu0 %v1703_v5 }
 0x270   : > { %v1039_v27 = vrot.slane %v1038_v52, 2  ;;  %v1046_v41 = vrot.slane %v1045_v46, 2  ;;  %v1585_v40 = vsel %vm1584_vm12, %v1035_v59, %v1583_v53  ;;  %v1694_v28 = vld [vmem:[#allocation10 + $0x20] sm:$0xff] }
 0x271   : > { %v1497_v43 = vpop.permute.xlu1 %1496  ;;  %1725 = vmatpush.msrb.mxu3 %v1702_v34  ;;  %1746 = vmatpush.msra.mxu0 %v1701_v19 }
 0x272   : > { %v1040_v14 = vadd.f32 %v1039_v27, %v1038_v52  ;;  %v1506_v42 = vmul.f32 %v2224_v0, %v1497_v43  ;;  %v1047_v3 = vadd.f32 %v1046_v41, %v1045_v46  ;;  %v1690_v52 = vld [vmem:[#allocation10] sm:$0xff]  ;;  %v1618_v46 = vperm.slane %v533_v8, 1  ;;  %v1693_v41 = vld [vmem:[#allocation10 + $0x18] sm:$0xff]  ;;  %v1691_v43 = vld [vmem:[#allocation10 + $0x8] sm:$0xff] }
 0x273   : > { %1726 = vmatpush.msrb.mxu3 %v1700_v60  ;;  %1747 = vmatpush.msra.mxu0 %v1699_v22 }
 0x274   : > { %v1041_v48 = vrot.slane %v1040_v14, 1  ;;  %v1556_v61 = vsel %vm547_vm0, %v1506_v42, 0.0  ;;  %v1048_v49 = vrot.slane %v1047_v3, 1  ;;  %v1706_v42 = vld [vmem:[%s3339_s11] sm:$0x3] }
 0x275   : > { %v1557_v2 = vrot.slane %v1556_v61, 4  ;;  %1727 = vmatpush.msrb.mxu3 %v1698_v47  ;;  %1748 = vmatpush.msra.mxu0 %v1697_v29  ;;  %v1709_v50 = vperm.slane %v1706_v42, 1  ;;  %v1708_v44 = vperm.slane %v1706_v42, 0 }
 0x276   : > { %v1042_v4 = vadd.f32 %v1041_v48, %v1040_v14  ;;  %v1049_v26 = vadd.f32 %v1048_v49, %v1047_v3 }
 0x277   : > { %v1558_v24 = vadd.f32 %v1557_v2, %v1556_v61  ;;  %1728 = vmatpush.msrb.mxu3 %v1696_v63  ;;  %1749 = vmatpush.msra.mxu0 %v1695_v57 }
 0x278   : > { %v1587_v62 = vsel %vm1586_vm14, %v1042_v4, %v1585_v40 }
 0x279   : > { %v1559_v9 = vrot.slane %v1558_v24, 2  ;;  %v1589_v23 = vsel %vm1588_vm13, %v1049_v26, %v1587_v62  ;;  %1729 = vmatpush.msrb.mxu3 %v1694_v28  ;;  %1750 = vmatpush.msra.mxu0 %v1693_v41 }
 0x27a   : > { %1985 = vmatmul.msk.f32.vlgmr.msrb.gmra.mxu0 %vm547_vm0, %v1589_v23 }
 0x27b   : > { %v1560_v25 = vadd.f32 %v1559_v9, %v1558_v24  ;;  %1730 = vmatpush.msrb.mxu3 %v1692_v30  ;;  %1751 = vmatpush.msra.mxu0 %v1691_v43 }
 0x27d   : > { %v1561_v17 = vrot.slane %v1560_v25, 1  ;;  %1731 = vmatpush.msrb.mxu3 %v1690_v52 }
 0x27f   : > { %v1562_v39 = vadd.f32 %v1561_v17, %v1560_v25 }
 0x281   : > { %v1633_v56 = vsel %vm1588_vm13, %v1562_v39, %v1632_v51 }
 0x282   : > { %1986 = vmatmul.msk.f32.vlgmr.msra.gmra.mxu1 %vm547_vm0, %v1633_v56 }
 0x2f7   : > { %v1609_v21 = vpop.f32.mrf.mxu0 }
 0x2f8   : > { %v1610_v35 = vadd.f32 %v1609_v21, %v1567_v12 }
 0x2fa   : > { %v1612_v27 = vmax.f32 %v1610_v35, 0.0 }
 0x2ff   : > { %v1653_v36 = vpop.f32.mrf.mxu1 }
 0x300   : > { %v1654_v31 = vadd.f32 %v1653_v36, %v1618_v46 }
 0x302   : > { %v1656_v16 = vmax.f32 %v1654_v31, 0.0 }
 0x304   : > { %v1657_v33 = vmul.f32 %v1656_v16, %v1612_v27 }
 0x306   : > { %1987 = vmatmul.msk.f32.vlgmr.msrb.gmra.mxu2 %vm547_vm0, %v1657_v33 }
 0x389   : > { %v1686_v58 = vpop.f32.mrf.mxu2 }
 0x38a   : > { %v1687_v14 = vadd.f32 %v2104_v55, %v1686_v58 }
 0x38c   : > { %v1689_v0 = vmax.f32 %v1687_v14, 0.0 }
 0x38e   : > { %1988 = vmatmul.msk.f32.vlgmr.msrb.gmra.mxu3 %vm1712_vm15, %v1689_v0  ;;  %1989 = vmatmul.msk.f32.vlgmr.msra.gmra.mxu0 %vm1712_vm15, %v1689_v0 }
 0x40b   : > { %v1753_v6 = vpop.f32.mrf.mxu0 }
 0x40c   : > { %v1754_v59 = vadd.f32 %v1753_v6, %v1709_v50 }
 0x40e   : > { %v1991_v3 = vmul.f32 -1.442695, %v1754_v59 }
 0x410   : > { %2201 = vpow2.f32 %v1991_v3 }
 0x411   : > { %v1733_v48 = vpop.f32.mrf.mxu3 }
 0x412   : > { %v1734_v61 = vadd.f32 %v1733_v48, %v1708_v44 }
 0x414   : > { %v1990_v54 = vmul.f32 -1.442695, %v1734_v61 }
 0x416   : > { %v2202_v49 = vpop.eup %2201  ;;  %2203 = vpow2.f32 %v1990_v54 }
 0x417   : > { %v1763_v2 = vadd.f32 1.0, %v2202_v49 }
 0x419   : > { %2205 = vrcp.f32 %v1763_v2  ;;  %v1790_v24 = vand.u32 2147483648, %v1763_v2  ;;  %v1788_v1 = vand.u32 2147483647, %v1763_v2  ;;  %vm1784_vm1 = vweird.f32 %v1763_v2 }
 0x41b   : > { %v1791_v23 = vor.u32 1.1754944e-38, %v1790_v24  ;;  %vm1789_vm3 = vcmp.eq.f32.partialorder %v1788_v1, 8.507059e+37 }
 0x41c   : > { %v2204_v53 = vpop.eup %2203 }
 0x41d   : > { %v1762_v37 = vadd.f32 1.0, %v2204_v53 }
 0x41f   : > { %v2206_v7 = vpop.eup %2205  ;;  %2207 = vrcp.f32 %v1762_v37  ;;  %v1775_v20 = vand.u32 2147483648, %v1762_v37  ;;  %v1773_v38 = vand.u32 2147483647, %v1762_v37  ;;  %vm1769_vm5 = vweird.f32 %v1762_v37 }
 0x420   : > { %v1780_v4 = vmul.f32 %v2206_v7, %v1763_v2  ;;  %vm1785_vm0 = vweird.f32 %v2206_v7 }
 0x421   : > { %vm1786_vm2 = vmor %vm1784_vm1, %vm1785_vm0  ;;  %v1776_v39 = vor.u32 1.1754944e-38, %v1775_v20  ;;  %vm1774_vm7 = vcmp.eq.f32.partialorder %v1773_v38, 8.507059e+37 }
 0x422   : > { %v1781_v26 = vsub.f32 1.0, %v1780_v4 }
 0x424   : > { %v1782_v40 = vmul.f32 %v2206_v7, %v1781_v26 }
 0x425   : > { %v2208_v62 = vpop.eup %2207 }
 0x426   : > { %v1765_v32 = vmul.f32 %v2208_v62, %v1762_v37  ;;  %v1783_v9 = vadd.f32 %v2206_v7, %v1782_v40  ;;  %vm1770_vm4 = vweird.f32 %v2208_v62 }
 0x427   : > { %vm1771_vm6 = vmor %vm1769_vm5, %vm1770_vm4 }
 0x428   : > { %v1766_v10 = vsub.f32 1.0, %v1765_v32  ;;  %v1787_v15 = vsel %vm1786_vm2, %v2206_v7, %v1783_v9 }
 0x429   : > { %v1792_v25 = vsel %vm1789_vm3, %v1791_v23, %v1787_v15 }
 0x42a   : > { %v1767_v17 = vmul.f32 %v2208_v62, %v1766_v10  ;;  %1795 = vst [vmem:[%s524_s28 + $0x8] sm:$0xff] %v1792_v25 }
 0x42c   : > { %v1768_v11 = vadd.f32 %v2208_v62, %v1767_v17 }
 0x42e   : > { %v1772_v51 = vsel %vm1771_vm6, %v2208_v62, %v1768_v11 }
 0x42f   : > { %v1777_v56 = vsel %vm1774_vm7, %v1776_v39, %v1772_v51 }
 0x430   : > { %1794 = vst [vmem:[%s524_s28] sm:$0xff] %v1777_v56 }
 0x431   : > { %2402 = shalt.err (!%p2399_p11)
}
 0x432   : > { %2020 = dma.vmem_to_hbm [thread:$0]  (%p2618_p7), %s1811_s25, 256, %s1813_s21, %s1797_s27  }
 0x433 PF: > { %s3383_s29 = sld [smem:[#allocation17_spill]]  ;;  %p3385_p12 = scmp.ge.s32.totalorder %s2453_s24, 2 }
 0x435   : > { %p2040_p13 = pnand %p3385_p12, %p2564_p6 }
 0x437   : > { %p2041_p0 = pneg %p2040_p13 }
 0x439   : > { %s1824_s30 = sand.u32 1, %s3383_s29  }
 0x43a   : > { %s1825_s26 = scalar_lea.sflag [#allocation4], %s1824_s30 }
 0x43b   : > { %2436 = dma.done.wait (%p2041_p0), %s1825_s26, 256  }
 0x43c   : > { %2438 = vsyncadd (%p2041_p0), %s1825_s26, 4294967040  ;;  %s3386_s24 = sld [smem:[#allocation20_spill]]  ;;  %s3389_s21 = smov %s2445_s22 }
 0x43d   : > { %s3387_s20 = sld [smem:[#allocation18_spill]] }
 0x43e   : > { %s3388_s23 = sld [smem:[#allocation21_spill]] }
 0x442   : > { %p29_p3 = scmp.ge.s32.totalorder %s3386_s24, 4  }
 0x443   : > { %s3390_s22 = smov %s3387_s20 }
 0x444   :  { %31 = sbr.rel (!%p29_p3) target bundleno = 13 (0xd), region = 140 }
 0x449   :  { %1831 = vsyncpa [#allocation3], 1 }
 0x44a   :  { %1833 = vsyncpa [#allocation3 + $0x1], 1 }
 0x44b   :  { %1834 = vsyncpa [#allocation6], 1 }
 0x44c   :  { %1836 = vsyncpa [#allocation6 + $0x1], 1 }
 0x44d   :  { %1837 = vsyncpa [#allocation9], 1 }
 0x44e   :  { %1838 = vsyncpa [#allocation4], 1 }
 0x44f   :  { %1840 = vsyncpa [#allocation4 + $0x1], 1 }

</bundles_post_ra>
